<compile_context>
chip_gen: v6e
topology: v6e:2x2x1
jax: 0.10.0
libtpu: 0.0.40
codegen_flags: <defaults>
</compile_context>

<pallas_src>
import math

import jax
import jax.numpy as jnp
from jax.experimental import pallas as pl
from jax.experimental.pallas import tpu as pltpu

BN_EPS = 1e-5


def calc_conv_layer_output_size(n, k, stride):
    # Integer math (the PyTorch helper uses float division + int(); identical
    # for sane sizes, exact integer math avoids off-by-one risk).
    return (n - 4 * k) // stride + 1


def calc_pool_output_size(n, padding, kernel_size, stride):
    return math.ceil((n + padding - (kernel_size - 1) - 1) / stride) + 1


def _round_up(x, m):
    return (x + m - 1) // m * m


# ----------------------------------------------------------------------------
# Fused kernel: Conv1d(1->C) + ReLU + BN + ceil-mode MaxPool + flatten
#               + Linear(F,H) + ReLU + BN + Linear(H,1)
# Layout: batch on the LANE dimension (inputs are x^T tiles of shape (L, TB)).
# ----------------------------------------------------------------------------
def make_fused_convnet_kernel(C, K, conv_stride, pool, L_conv, L_pool, H,
                              L_slot, TB):
    L_sh = (L_pool - 1) * pool + 1            # shifted-window-max length
    span = conv_stride * (L_conv - 1) + 1     # input span covered by one tap
    NEG = -3.0e38   # finite "-inf" stand-in: NEG * 0-weight == 0 (never -inf!)

    def kernel(xt_ref, wc_ref, bc_ref, s1_ref, t1_ref, w1p_ref,
               b1_ref, s2_ref, t2_ref, w2_ref, b2_ref, o_ref, stage_ref):
        # Stage scratch: per channel c, rows [c*L_slot, c*L_slot+L_sh) will hold
        # the running shifted-window maxima.  Rows past L_conv keep the NEG
        # prefill (ceil-mode pool padding); every row without a matching
        # nonzero column in w1p contributes exactly 0 to the matmul.
        stage_ref[...] = jnp.full((C * L_slot, TB), NEG, jnp.float32)

        for c in range(C):
            # --- Conv1d (in_channels=1), channel c: K scalar-tap FMAs (VPU),
            # batch on lanes.  Taps are re-read from VMEM each time (vld slots
            # are idle) to keep the live vreg set small at large TB.
            zc = None
            for k in range(K):
                if conv_stride == 1:
                    tap = xt_ref[k:k + L_conv, :]                 # (L_conv, TB)
                else:
                    tap = xt_ref[k:k + span:conv_stride, :]
                term = tap * wc_ref[c, k]
                zc = term if zc is None else zc + term
            zc = jnp.maximum(zc + bc_ref[0, c], 0.0)              # bias + ReLU
            zc = zc * s1_ref[0, c] + t1_ref[0, c]                 # folded BN (eval)

            # --- MaxPool1d(pool, stride=pool, ceil_mode=True): running max of
            # `pool` contiguous shifted slices read back from the NEG-padded
            # scratch slot (no concatenate, no strided downsample in-kernel —
            # the stride-`pool` selection lives in w1p's zero columns).
            base = c * L_slot
            stage_ref[base:base + L_conv, :] = zc
            m = stage_ref[base:base + L_sh, :]
            for p in range(1, pool):
                m = jnp.maximum(m, stage_ref[base + p:base + p + L_sh, :])
            stage_ref[base:base + L_sh, :] = m

        # --- Linear(F, H): ONE MXU matmul over all channels (pool downsample +
        # channel-major flatten are folded into the packed weight).
        h = jnp.dot(w1p_ref[...], stage_ref[...],
                    preferred_element_type=jnp.float32)           # (H, TB)
        h = jnp.maximum(h + b1_ref[...], 0.0)                     # bias + ReLU
        h = h * s2_ref[...] + t2_ref[...]                         # folded BN (eval)
        # --- Linear(H, 1): VPU multiply + sublane reduce -> lane-dense row.
        out = jnp.sum(h * w2_ref[...], axis=0, keepdims=True) + b2_ref[0, 0]
        o_ref[...] = out.reshape(1, 1, TB)

    return kernel


# ----------------------------------------------------------------------------
# One-time parameter packing (outside the per-call forward).
# ----------------------------------------------------------------------------
def prepare_params(params, cfg, L):
    C = cfg["num_channels"]
    pool = cfg["pool_kernel_size"]
    H = cfg["h1_size"]
    stride = cfg["conv_stride"]
    L_conv = calc_conv_layer_output_size(L, cfg["conv_kernel_size_nts"], stride)
    L_pool = calc_pool_output_size(L_conv, 0, pool, pool)
    L_sh = (L_pool - 1) * pool + 1
    L_slot = _round_up(max(L_pool * pool, L_conv), 8)     # per-channel slot rows
    f32 = jnp.float32

    # Fold BatchNorms into scale/shift (eval mode, running statistics).
    s1 = (params["bn1_g"] / jnp.sqrt(params["bn1_rv"] + BN_EPS)).astype(f32)
    t1 = (params["bn1_b"] - params["bn1_rm"] * s1).astype(f32)
    s2 = (params["bn2_g"] / jnp.sqrt(params["bn2_rv"] + BN_EPS)).astype(f32)
    t2 = (params["bn2_b"] - params["bn2_rm"] * s2).astype(f32)

    # Pack Linear-1 weight (H, C*L_pool) (channel-major flatten order) into ONE
    # (H, C*L_slot) matrix: column c*L_slot + j*pool carries w1[:, c*L_pool+j],
    # all other columns are zero.  This folds the pool downsample, the flatten
    # and the staging-slot padding into the single in-kernel MXU matmul.
    w1r = params["w1"].reshape(H, C, L_pool).astype(f32)
    w1p = jnp.zeros((H, C, L_slot), f32)
    w1p = w1p.at[:, :, 0:L_sh:pool].set(w1r)
    w1p = w1p.reshape(H, C * L_slot)

    return dict(
        wc=params["wc"].astype(f32),                    # (C, K)        SMEM
        bc=params["bc"].reshape(1, C).astype(f32),      # (1, C)        SMEM
        s1=s1.reshape(1, C), t1=t1.reshape(1, C),       # (1, C)        SMEM
        w1p=w1p,                                        # (H, C*L_slot) VMEM
        b1=params["b1"].reshape(H, 1).astype(f32),      # (H, 1)        VMEM
        s2=s2.reshape(H, 1), t2=t2.reshape(H, 1),       # (H, 1)        VMEM
        w2=params["w2"].reshape(H, 1).astype(f32),      # (H, 1)        VMEM
        b2=params["b2"].reshape(1, 1).astype(f32),      # (1, 1)        SMEM
    )


def _pick_batch_tile(B):
    # Batch rides the lane dimension: prefer lane tiles >= 128, keeping >= 2
    # grid steps when possible so v7x's two TensorCores both get work.
    for tb in (512, 256, 128):
        if B % tb == 0 and B // tb >= 2:
            return tb
    if B % 128 == 0:
        return 128          # grid=1 (fine on single-TC v5e/v6e)
    return B                # small / ragged batch: one lane-padded block


# ----------------------------------------------------------------------------
# Forward wrapper: one fused pallas_call, batch-tiled "parallel" grid.
# ----------------------------------------------------------------------------
def convnet_forward(x, prepped, cfg):
    B, L = x.shape
    C = cfg["num_channels"]
    K = cfg["conv_kernel_size_nts"] * 4
    stride = cfg["conv_stride"]
    pool = cfg["pool_kernel_size"]
    H = cfg["h1_size"]
    L_conv = calc_conv_layer_output_size(L, cfg["conv_kernel_size_nts"], stride)
    L_pool = calc_pool_output_size(L_conv, 0, pool, pool)
    L_slot = _round_up(max(L_pool * pool, L_conv), 8)
    Kc = C * L_slot

    TB = _pick_batch_tile(B)
    G = B // TB
    xt = x.T                                   # (L, B): batch on lanes in-kernel

    kern = make_fused_convnet_kernel(C, K, stride, pool, L_conv, L_pool, H,
                                     L_slot, TB)
    SMEM = pltpu.MemorySpace.SMEM

    # Per-step VMEM footprint is tiny (<1 MiB even at TB=512), well under the
    # default scoped limits on v5e/v6e/v7x, so no vmem_limit_bytes override.
    out = pl.pallas_call(
        kern,
        out_shape=jax.ShapeDtypeStruct((G, 1, TB), jnp.float32),
        grid=(G,),
        in_specs=[
            pl.BlockSpec((L, TB), lambda i: (0, i)),                     # x^T (VMEM)
            pl.BlockSpec((C, K), lambda i: (0, 0), memory_space=SMEM),   # conv weight
            pl.BlockSpec((1, C), lambda i: (0, 0), memory_space=SMEM),   # conv bias
            pl.BlockSpec((1, C), lambda i: (0, 0), memory_space=SMEM),   # bn1 scale
            pl.BlockSpec((1, C), lambda i: (0, 0), memory_space=SMEM),   # bn1 shift
            pl.BlockSpec((H, Kc), lambda i: (0, 0)),                     # packed w1
            pl.BlockSpec((H, 1), lambda i: (0, 0)),                      # b1 column
            pl.BlockSpec((H, 1), lambda i: (0, 0)),                      # bn2 scale
            pl.BlockSpec((H, 1), lambda i: (0, 0)),                      # bn2 shift
            pl.BlockSpec((H, 1), lambda i: (0, 0)),                      # w2 column
            pl.BlockSpec((1, 1), lambda i: (0, 0), memory_space=SMEM),   # b2
        ],
        out_specs=pl.BlockSpec((1, 1, TB), lambda i: (i, 0, 0)),         # lane-dense
        scratch_shapes=[pltpu.VMEM((Kc, TB), jnp.float32)],              # staging
        compiler_params=pltpu.CompilerParams(dimension_semantics=("parallel",)),
    )(xt, prepped["wc"], prepped["bc"], prepped["s1"], prepped["t1"],
      prepped["w1p"], prepped["b1"], prepped["s2"], prepped["t2"],
      prepped["w2"], prepped["b2"])

    return out.reshape(B, 1)


# ----------------------------------------------------------------------------
# Pure-JAX reference (same eval-mode semantics, unfolded params).
# ----------------------------------------------------------------------------
def convnet_reference(x, params, cfg):
    B, L = x.shape
    C = cfg["num_channels"]
    K = cfg["conv_kernel_size_nts"] * 4
    stride = cfg["conv_stride"]
    pool = cfg["pool_kernel_size"]
    L_conv = calc_conv_layer_output_size(L, cfg["conv_kernel_size_nts"], stride)
    L_pool = calc_pool_output_size(L_conv, 0, pool, pool)
    HI = jax.lax.Precision.HIGHEST

    span = stride * (L_conv - 1) + 1
    patches = jnp.stack([x[:, k:k + span:stride] for k in range(K)], axis=-1)
    conv = jnp.einsum("blk,ck->bcl", patches, params["wc"], precision=HI) \
        + params["bc"][None, :, None]
    conv = jnp.maximum(conv, 0.0)
    inv = 1.0 / jnp.sqrt(params["bn1_rv"] + BN_EPS)
    conv = (conv - params["bn1_rm"][None, :, None]) * (params["bn1_g"] * inv)[None, :, None] \
        + params["bn1_b"][None, :, None]
    cols = [jnp.max(conv[:, :, j * pool: min(j * pool + pool, L_conv)],
                    axis=-1, keepdims=True) for j in range(L_pool)]
    flat = jnp.concatenate(cols, axis=-1).reshape(B, C * L_pool)
    h = jnp.maximum(jnp.dot(flat, params["w1"].T, precision=HI) + params["b1"], 0.0)
    inv2 = 1.0 / jnp.sqrt(params["bn2_rv"] + BN_EPS)
    h = (h - params["bn2_rm"]) * (params["bn2_g"] * inv2) + params["bn2_b"]
    return jnp.dot(h, params["w2"].T, precision=HI) + params["b2"]


if __name__ == "__main__":
    cfg = dict(input_len=32, num_channels=4, conv_kernel_size_nts=2,
               conv_stride=1, pool_kernel_size=3, h1_size=32)
    B = 16
    L = cfg["input_len"]
    C = cfg["num_channels"]
    K = cfg["conv_kernel_size_nts"] * 4
    L_conv = calc_conv_layer_output_size(L, cfg["conv_kernel_size_nts"], cfg["conv_stride"])
    L_pool = calc_pool_output_size(L_conv, 0, cfg["pool_kernel_size"], cfg["pool_kernel_size"])
    F = C * L_pool
    H = cfg["h1_size"]

    key = jax.random.PRNGKey(0)
    ks = jax.random.split(key, 16)
    f32 = jnp.float32
    params = {
        # Conv1d(1, C, K)
        "wc": (0.2 * jax.random.normal(ks[0], (C, K))).astype(f32),
        "bc": (0.05 * jax.random.normal(ks[1], (C,))).astype(f32),
        # BatchNorm1d(C) running stats / affine
        "bn1_g": (1.0 + 0.1 * jax.random.normal(ks[2], (C,))).astype(f32),
        "bn1_b": (0.1 * jax.random.normal(ks[3], (C,))).astype(f32),
        "bn1_rm": (0.05 * jax.random.normal(ks[4], (C,))).astype(f32),
        "bn1_rv": (1.0 + 0.1 * jnp.abs(jax.random.normal(ks[5], (C,)))).astype(f32),
        # Linear(F, H)
        "w1": (0.1 * jax.random.normal(ks[6], (H, F))).astype(f32),
        "b1": (0.05 * jax.random.normal(ks[7], (H,))).astype(f32),
        # BatchNorm1d(H)
        "bn2_g": (1.0 + 0.1 * jax.random.normal(ks[8], (H,))).astype(f32),
        "bn2_b": (0.1 * jax.random.normal(ks[9], (H,))).astype(f32),
        "bn2_rm": (0.05 * jax.random.normal(ks[10], (H,))).astype(f32),
        "bn2_rv": (1.0 + 0.1 * jnp.abs(jax.random.normal(ks[11], (H,)))).astype(f32),
        # Linear(H, 1)
        "w2": (0.1 * jax.random.normal(ks[12], (1, H))).astype(f32),
        "b2": (0.01 * jnp.ones((1,))).astype(f32),
    }
    x = jax.random.normal(ks[13], (B, L), dtype=f32)

    prepped = prepare_params(params, cfg, L)          # once, outside the forward
    fwd = jax.jit(lambda xb, p: convnet_forward(xb, p, cfg))

    out = jax.block_until_ready(fwd(x, prepped))
    ref = convnet_reference(x, params, cfg)

    assert out.shape == (B, 1), out.shape
    assert jnp.allclose(out, ref, atol=2e-3, rtol=2e-3), (out, ref)

    print("KERNEL_OK")
</pallas_src>

<mosaic_0001>
module attributes {stable_mosaic.version = 11 : i64} {
  func.func @kernel(%arg0: i32, %arg1: memref<32x16xf32, #tpu.memory_space<vmem>>, %arg2: memref<4x8xf32, #tpu.memory_space<smem>>, %arg3: memref<1x4xf32, #tpu.memory_space<smem>>, %arg4: memref<1x4xf32, #tpu.memory_space<smem>>, %arg5: memref<1x4xf32, #tpu.memory_space<smem>>, %arg6: memref<32x128xf32, #tpu.memory_space<vmem>>, %arg7: memref<32x1xf32, #tpu.memory_space<vmem>>, %arg8: memref<32x1xf32, #tpu.memory_space<vmem>>, %arg9: memref<32x1xf32, #tpu.memory_space<vmem>>, %arg10: memref<32x1xf32, #tpu.memory_space<vmem>>, %arg11: memref<1x1xf32, #tpu.memory_space<smem>>, %arg12: memref<1x1x16xf32, #tpu.memory_space<vmem>>, %arg13: memref<128x16xf32, #tpu.memory_space<vmem>>) attributes {dimension_semantics = [#tpu.dimension_semantics<parallel>], iteration_bounds = array<i64: 1>, scalar_prefetch = 0 : i64, scratch_operands = 1 : i64, tpu.core_type = #tpu.core_type<tc>, window_params = [{transform_indices = @transform_0, window_bounds = array<i64: 32, 16>}, {transform_indices = @transform_1, window_bounds = array<i64: 4, 8>}, {transform_indices = @transform_2, window_bounds = array<i64: 1, 4>}, {transform_indices = @transform_3, window_bounds = array<i64: 1, 4>}, {transform_indices = @transform_4, window_bounds = array<i64: 1, 4>}, {pipeline_mode = #tpu.pipeline_mode<synchronous>, transform_indices = @transform_5, window_bounds = array<i64: 32, 128>}, {pipeline_mode = #tpu.pipeline_mode<synchronous>, transform_indices = @transform_6, window_bounds = array<i64: 32, 1>}, {pipeline_mode = #tpu.pipeline_mode<synchronous>, transform_indices = @transform_7, window_bounds = array<i64: 32, 1>}, {pipeline_mode = #tpu.pipeline_mode<synchronous>, transform_indices = @transform_8, window_bounds = array<i64: 32, 1>}, {pipeline_mode = #tpu.pipeline_mode<synchronous>, transform_indices = @transform_9, window_bounds = array<i64: 32, 1>}, {transform_indices = @transform_10, window_bounds = array<i64: 1, 1>}, {transform_indices = @transform_11, window_bounds = array<i64: 1, 1, 16>}]} {
    %cst = arith.constant -3.000000e+38 : f32
    %0 = vector.broadcast %cst : f32 to vector<128x16xf32>
    %c0 = arith.constant 0 : index
    %c0_0 = arith.constant 0 : index
    %1 = vector.load %arg13[%c0, %c0_0] : memref<128x16xf32, #tpu.memory_space<vmem>>, vector<128x16xf32>
    tpu.vector_store %arg13[%c0, %c0_0], %0 {strides = array<i32>} : memref<128x16xf32, #tpu.memory_space<vmem>>, vector<128x16xf32>,
    %c0_1 = arith.constant 0 : index
    %c0_2 = arith.constant 0 : index
    %2 = vector.load %arg1[%c0_1, %c0_2] : memref<32x16xf32, #tpu.memory_space<vmem>>, vector<25x16xf32>
    %c0_3 = arith.constant 0 : index
    %c0_4 = arith.constant 0 : index
    %3 = memref.load %arg2[%c0_3, %c0_4] : memref<4x8xf32, #tpu.memory_space<smem>>
    %4 = vector.broadcast %3 : f32 to vector<25x16xf32>
    %5 = arith.mulf %2, %4 : vector<25x16xf32>
    %c1 = arith.constant 1 : index
    %c0_5 = arith.constant 0 : index
    %6 = vector.load %arg1[%c1, %c0_5] : memref<32x16xf32, #tpu.memory_space<vmem>>, vector<25x16xf32>
    %c0_6 = arith.constant 0 : index
    %c1_7 = arith.constant 1 : index
    %7 = memref.load %arg2[%c0_6, %c1_7] : memref<4x8xf32, #tpu.memory_space<smem>>
    %8 = vector.broadcast %7 : f32 to vector<25x16xf32>
    %9 = arith.mulf %6, %8 : vector<25x16xf32>
    %10 = arith.addf %5, %9 : vector<25x16xf32>
    %c2 = arith.constant 2 : index
    %c0_8 = arith.constant 0 : index
    %11 = vector.load %arg1[%c2, %c0_8] : memref<32x16xf32, #tpu.memory_space<vmem>>, vector<25x16xf32>
    %c0_9 = arith.constant 0 : index
    %c2_10 = arith.constant 2 : index
    %12 = memref.load %arg2[%c0_9, %c2_10] : memref<4x8xf32, #tpu.memory_space<smem>>
    %13 = vector.broadcast %12 : f32 to vector<25x16xf32>
    %14 = arith.mulf %11, %13 : vector<25x16xf32>
    %15 = arith.addf %10, %14 : vector<25x16xf32>
    %c3 = arith.constant 3 : index
    %c0_11 = arith.constant 0 : index
    %16 = vector.load %arg1[%c3, %c0_11] : memref<32x16xf32, #tpu.memory_space<vmem>>, vector<25x16xf32>
    %c0_12 = arith.constant 0 : index
    %c3_13 = arith.constant 3 : index
    %17 = memref.load %arg2[%c0_12, %c3_13] : memref<4x8xf32, #tpu.memory_space<smem>>
    %18 = vector.broadcast %17 : f32 to vector<25x16xf32>
    %19 = arith.mulf %16, %18 : vector<25x16xf32>
    %20 = arith.addf %15, %19 : vector<25x16xf32>
    %c4 = arith.constant 4 : index
    %c0_14 = arith.constant 0 : index
    %21 = vector.load %arg1[%c4, %c0_14] : memref<32x16xf32, #tpu.memory_space<vmem>>, vector<25x16xf32>
    %c0_15 = arith.constant 0 : index
    %c4_16 = arith.constant 4 : index
    %22 = memref.load %arg2[%c0_15, %c4_16] : memref<4x8xf32, #tpu.memory_space<smem>>
    %23 = vector.broadcast %22 : f32 to vector<25x16xf32>
    %24 = arith.mulf %21, %23 : vector<25x16xf32>
    %25 = arith.addf %20, %24 : vector<25x16xf32>
    %c5 = arith.constant 5 : index
    %c0_17 = arith.constant 0 : index
    %26 = vector.load %arg1[%c5, %c0_17] : memref<32x16xf32, #tpu.memory_space<vmem>>, vector<25x16xf32>
    %c0_18 = arith.constant 0 : index
    %c5_19 = arith.constant 5 : index
    %27 = memref.load %arg2[%c0_18, %c5_19] : memref<4x8xf32, #tpu.memory_space<smem>>
    %28 = vector.broadcast %27 : f32 to vector<25x16xf32>
    %29 = arith.mulf %26, %28 : vector<25x16xf32>
    %30 = arith.addf %25, %29 : vector<25x16xf32>
    %c6 = arith.constant 6 : index
    %c0_20 = arith.constant 0 : index
    %31 = vector.load %arg1[%c6, %c0_20] : memref<32x16xf32, #tpu.memory_space<vmem>>, vector<25x16xf32>
    %c0_21 = arith.constant 0 : index
    %c6_22 = arith.constant 6 : index
    %32 = memref.load %arg2[%c0_21, %c6_22] : memref<4x8xf32, #tpu.memory_space<smem>>
    %33 = vector.broadcast %32 : f32 to vector<25x16xf32>
    %34 = arith.mulf %31, %33 : vector<25x16xf32>
    %35 = arith.addf %30, %34 : vector<25x16xf32>
    %c7 = arith.constant 7 : index
    %c0_23 = arith.constant 0 : index
    %36 = vector.load %arg1[%c7, %c0_23] : memref<32x16xf32, #tpu.memory_space<vmem>>, vector<25x16xf32>
    %c0_24 = arith.constant 0 : index
    %c7_25 = arith.constant 7 : index
    %37 = memref.load %arg2[%c0_24, %c7_25] : memref<4x8xf32, #tpu.memory_space<smem>>
    %38 = vector.broadcast %37 : f32 to vector<25x16xf32>
    %39 = arith.mulf %36, %38 : vector<25x16xf32>
    %40 = arith.addf %35, %39 : vector<25x16xf32>
    %c0_26 = arith.constant 0 : index
    %c0_27 = arith.constant 0 : index
    %41 = memref.load %arg3[%c0_26, %c0_27] : memref<1x4xf32, #tpu.memory_space<smem>>
    %42 = vector.broadcast %41 : f32 to vector<25x16xf32>
    %43 = arith.addf %40, %42 : vector<25x16xf32>
    %cst_28 = arith.constant 0.000000e+00 : f32
    %44 = vector.broadcast %cst_28 : f32 to vector<25x16xf32>
    %45 = arith.maximumf %43, %44 : vector<25x16xf32>
    %c0_29 = arith.constant 0 : index
    %c0_30 = arith.constant 0 : index
    %46 = memref.load %arg4[%c0_29, %c0_30] : memref<1x4xf32, #tpu.memory_space<smem>>
    %47 = vector.broadcast %46 : f32 to vector<25x16xf32>
    %48 = arith.mulf %45, %47 : vector<25x16xf32>
    %c0_31 = arith.constant 0 : index
    %c0_32 = arith.constant 0 : index
    %49 = memref.load %arg5[%c0_31, %c0_32] : memref<1x4xf32, #tpu.memory_space<smem>>
    %50 = vector.broadcast %49 : f32 to vector<25x16xf32>
    %51 = arith.addf %48, %50 : vector<25x16xf32>
    %c0_33 = arith.constant 0 : index
    %c0_34 = arith.constant 0 : index
    %52 = vector.load %arg13[%c0_33, %c0_34] : memref<128x16xf32, #tpu.memory_space<vmem>>, vector<25x16xf32>
    tpu.vector_store %arg13[%c0_33, %c0_34], %51 {strides = array<i32>} : memref<128x16xf32, #tpu.memory_space<vmem>>, vector<25x16xf32>,
    %c0_35 = arith.constant 0 : index
    %c0_36 = arith.constant 0 : index
    %53 = vector.load %arg13[%c0_35, %c0_36] : memref<128x16xf32, #tpu.memory_space<vmem>>, vector<25x16xf32>
    %c1_37 = arith.constant 1 : index
    %c0_38 = arith.constant 0 : index
    %54 = vector.load %arg13[%c1_37, %c0_38] : memref<128x16xf32, #tpu.memory_space<vmem>>, vector<25x16xf32>
    %55 = arith.maximumf %53, %54 : vector<25x16xf32>
    %c2_39 = arith.constant 2 : index
    %c0_40 = arith.constant 0 : index
    %56 = vector.load %arg13[%c2_39, %c0_40] : memref<128x16xf32, #tpu.memory_space<vmem>>, vector<25x16xf32>
    %57 = arith.maximumf %55, %56 : vector<25x16xf32>
    %c0_41 = arith.constant 0 : index
    %c0_42 = arith.constant 0 : index
    %58 = vector.load %arg13[%c0_41, %c0_42] : memref<128x16xf32, #tpu.memory_space<vmem>>, vector<25x16xf32>
    tpu.vector_store %arg13[%c0_41, %c0_42], %57 {strides = array<i32>} : memref<128x16xf32, #tpu.memory_space<vmem>>, vector<25x16xf32>,
    %c0_43 = arith.constant 0 : index
    %c0_44 = arith.constant 0 : index
    %59 = vector.load %arg1[%c0_43, %c0_44] : memref<32x16xf32, #tpu.memory_space<vmem>>, vector<25x16xf32>
    %c1_45 = arith.constant 1 : index
    %c0_46 = arith.constant 0 : index
    %60 = memref.load %arg2[%c1_45, %c0_46] : memref<4x8xf32, #tpu.memory_space<smem>>
    %61 = vector.broadcast %60 : f32 to vector<25x16xf32>
    %62 = arith.mulf %59, %61 : vector<25x16xf32>
    %c1_47 = arith.constant 1 : index
    %c0_48 = arith.constant 0 : index
    %63 = vector.load %arg1[%c1_47, %c0_48] : memref<32x16xf32, #tpu.memory_space<vmem>>, vector<25x16xf32>
    %c1_49 = arith.constant 1 : index
    %c1_50 = arith.constant 1 : index
    %64 = memref.load %arg2[%c1_49, %c1_50] : memref<4x8xf32, #tpu.memory_space<smem>>
    %65 = vector.broadcast %64 : f32 to vector<25x16xf32>
    %66 = arith.mulf %63, %65 : vector<25x16xf32>
    %67 = arith.addf %62, %66 : vector<25x16xf32>
    %c2_51 = arith.constant 2 : index
    %c0_52 = arith.constant 0 : index
    %68 = vector.load %arg1[%c2_51, %c0_52] : memref<32x16xf32, #tpu.memory_space<vmem>>, vector<25x16xf32>
    %c1_53 = arith.constant 1 : index
    %c2_54 = arith.constant 2 : index
    %69 = memref.load %arg2[%c1_53, %c2_54] : memref<4x8xf32, #tpu.memory_space<smem>>
    %70 = vector.broadcast %69 : f32 to vector<25x16xf32>
    %71 = arith.mulf %68, %70 : vector<25x16xf32>
    %72 = arith.addf %67, %71 : vector<25x16xf32>
    %c3_55 = arith.constant 3 : index
    %c0_56 = arith.constant 0 : index
    %73 = vector.load %arg1[%c3_55, %c0_56] : memref<32x16xf32, #tpu.memory_space<vmem>>, vector<25x16xf32>
    %c1_57 = arith.constant 1 : index
    %c3_58 = arith.constant 3 : index
    %74 = memref.load %arg2[%c1_57, %c3_58] : memref<4x8xf32, #tpu.memory_space<smem>>
    %75 = vector.broadcast %74 : f32 to vector<25x16xf32>
    %76 = arith.mulf %73, %75 : vector<25x16xf32>
    %77 = arith.addf %72, %76 : vector<25x16xf32>
    %c4_59 = arith.constant 4 : index
    %c0_60 = arith.constant 0 : index
    %78 = vector.load %arg1[%c4_59, %c0_60] : memref<32x16xf32, #tpu.memory_space<vmem>>, vector<25x16xf32>
    %c1_61 = arith.constant 1 : index
    %c4_62 = arith.constant 4 : index
    %79 = memref.load %arg2[%c1_61, %c4_62] : memref<4x8xf32, #tpu.memory_space<smem>>
    %80 = vector.broadcast %79 : f32 to vector<25x16xf32>
    %81 = arith.mulf %78, %80 : vector<25x16xf32>
    %82 = arith.addf %77, %81 : vector<25x16xf32>
    %c5_63 = arith.constant 5 : index
    %c0_64 = arith.constant 0 : index
    %83 = vector.load %arg1[%c5_63, %c0_64] : memref<32x16xf32, #tpu.memory_space<vmem>>, vector<25x16xf32>
    %c1_65 = arith.constant 1 : index
    %c5_66 = arith.constant 5 : index
    %84 = memref.load %arg2[%c1_65, %c5_66] : memref<4x8xf32, #tpu.memory_space<smem>>
    %85 = vector.broadcast %84 : f32 to vector<25x16xf32>
    %86 = arith.mulf %83, %85 : vector<25x16xf32>
    %87 = arith.addf %82, %86 : vector<25x16xf32>
    %c6_67 = arith.constant 6 : index
    %c0_68 = arith.constant 0 : index
    %88 = vector.load %arg1[%c6_67, %c0_68] : memref<32x16xf32, #tpu.memory_space<vmem>>, vector<25x16xf32>
    %c1_69 = arith.constant 1 : index
    %c6_70 = arith.constant 6 : index
    %89 = memref.load %arg2[%c1_69, %c6_70] : memref<4x8xf32, #tpu.memory_space<smem>>
    %90 = vector.broadcast %89 : f32 to vector<25x16xf32>
    %91 = arith.mulf %88, %90 : vector<25x16xf32>
    %92 = arith.addf %87, %91 : vector<25x16xf32>
    %c7_71 = arith.constant 7 : index
    %c0_72 = arith.constant 0 : index
    %93 = vector.load %arg1[%c7_71, %c0_72] : memref<32x16xf32, #tpu.memory_space<vmem>>, vector<25x16xf32>
    %c1_73 = arith.constant 1 : index
    %c7_74 = arith.constant 7 : index
    %94 = memref.load %arg2[%c1_73, %c7_74] : memref<4x8xf32, #tpu.memory_space<smem>>
    %95 = vector.broadcast %94 : f32 to vector<25x16xf32>
    %96 = arith.mulf %93, %95 : vector<25x16xf32>
    %97 = arith.addf %92, %96 : vector<25x16xf32>
    %c0_75 = arith.constant 0 : index
    %c1_76 = arith.constant 1 : index
    %98 = memref.load %arg3[%c0_75, %c1_76] : memref<1x4xf32, #tpu.memory_space<smem>>
    %99 = vector.broadcast %98 : f32 to vector<25x16xf32>
    %100 = arith.addf %97, %99 : vector<25x16xf32>
    %cst_77 = arith.constant 0.000000e+00 : f32
    %101 = vector.broadcast %cst_77 : f32 to vector<25x16xf32>
    %102 = arith.maximumf %100, %101 : vector<25x16xf32>
    %c0_78 = arith.constant 0 : index
    %c1_79 = arith.constant 1 : index
    %103 = memref.load %arg4[%c0_78, %c1_79] : memref<1x4xf32, #tpu.memory_space<smem>>
    %104 = vector.broadcast %103 : f32 to vector<25x16xf32>
    %105 = arith.mulf %102, %104 : vector<25x16xf32>
    %c0_80 = arith.constant 0 : index
    %c1_81 = arith.constant 1 : index
    %106 = memref.load %arg5[%c0_80, %c1_81] : memref<1x4xf32, #tpu.memory_space<smem>>
    %107 = vector.broadcast %106 : f32 to vector<25x16xf32>
    %108 = arith.addf %105, %107 : vector<25x16xf32>
    %c32 = arith.constant 32 : index
    %c0_82 = arith.constant 0 : index
    %109 = vector.load %arg13[%c32, %c0_82] : memref<128x16xf32, #tpu.memory_space<vmem>>, vector<25x16xf32>
    tpu.vector_store %arg13[%c32, %c0_82], %108 {strides = array<i32>} : memref<128x16xf32, #tpu.memory_space<vmem>>, vector<25x16xf32>,
    %c32_83 = arith.constant 32 : index
    %c0_84 = arith.constant 0 : index
    %110 = vector.load %arg13[%c32_83, %c0_84] : memref<128x16xf32, #tpu.memory_space<vmem>>, vector<25x16xf32>
    %c33 = arith.constant 33 : index
    %c0_85 = arith.constant 0 : index
    %111 = vector.load %arg13[%c33, %c0_85] : memref<128x16xf32, #tpu.memory_space<vmem>>, vector<25x16xf32>
    %112 = arith.maximumf %110, %111 : vector<25x16xf32>
    %c34 = arith.constant 34 : index
    %c0_86 = arith.constant 0 : index
    %113 = vector.load %arg13[%c34, %c0_86] : memref<128x16xf32, #tpu.memory_space<vmem>>, vector<25x16xf32>
    %114 = arith.maximumf %112, %113 : vector<25x16xf32>
    %c32_87 = arith.constant 32 : index
    %c0_88 = arith.constant 0 : index
    %115 = vector.load %arg13[%c32_87, %c0_88] : memref<128x16xf32, #tpu.memory_space<vmem>>, vector<25x16xf32>
    tpu.vector_store %arg13[%c32_87, %c0_88], %114 {strides = array<i32>} : memref<128x16xf32, #tpu.memory_space<vmem>>, vector<25x16xf32>,
    %c0_89 = arith.constant 0 : index
    %c0_90 = arith.constant 0 : index
    %116 = vector.load %arg1[%c0_89, %c0_90] : memref<32x16xf32, #tpu.memory_space<vmem>>, vector<25x16xf32>
    %c2_91 = arith.constant 2 : index
    %c0_92 = arith.constant 0 : index
    %117 = memref.load %arg2[%c2_91, %c0_92] : memref<4x8xf32, #tpu.memory_space<smem>>
    %118 = vector.broadcast %117 : f32 to vector<25x16xf32>
    %119 = arith.mulf %116, %118 : vector<25x16xf32>
    %c1_93 = arith.constant 1 : index
    %c0_94 = arith.constant 0 : index
    %120 = vector.load %arg1[%c1_93, %c0_94] : memref<32x16xf32, #tpu.memory_space<vmem>>, vector<25x16xf32>
    %c2_95 = arith.constant 2 : index
    %c1_96 = arith.constant 1 : index
    %121 = memref.load %arg2[%c2_95, %c1_96] : memref<4x8xf32, #tpu.memory_space<smem>>
    %122 = vector.broadcast %121 : f32 to vector<25x16xf32>
    %123 = arith.mulf %120, %122 : vector<25x16xf32>
    %124 = arith.addf %119, %123 : vector<25x16xf32>
    %c2_97 = arith.constant 2 : index
    %c0_98 = arith.constant 0 : index
    %125 = vector.load %arg1[%c2_97, %c0_98] : memref<32x16xf32, #tpu.memory_space<vmem>>, vector<25x16xf32>
    %c2_99 = arith.constant 2 : index
    %c2_100 = arith.constant 2 : index
    %126 = memref.load %arg2[%c2_99, %c2_100] : memref<4x8xf32, #tpu.memory_space<smem>>
    %127 = vector.broadcast %126 : f32 to vector<25x16xf32>
    %128 = arith.mulf %125, %127 : vector<25x16xf32>
    %129 = arith.addf %124, %128 : vector<25x16xf32>
    %c3_101 = arith.constant 3 : index
    %c0_102 = arith.constant 0 : index
    %130 = vector.load %arg1[%c3_101, %c0_102] : memref<32x16xf32, #tpu.memory_space<vmem>>, vector<25x16xf32>
    %c2_103 = arith.constant 2 : index
    %c3_104 = arith.constant 3 : index
    %131 = memref.load %arg2[%c2_103, %c3_104] : memref<4x8xf32, #tpu.memory_space<smem>>
    %132 = vector.broadcast %131 : f32 to vector<25x16xf32>
    %133 = arith.mulf %130, %132 : vector<25x16xf32>
    %134 = arith.addf %129, %133 : vector<25x16xf32>
    %c4_105 = arith.constant 4 : index
    %c0_106 = arith.constant 0 : index
    %135 = vector.load %arg1[%c4_105, %c0_106] : memref<32x16xf32, #tpu.memory_space<vmem>>, vector<25x16xf32>
    %c2_107 = arith.constant 2 : index
    %c4_108 = arith.constant 4 : index
    %136 = memref.load %arg2[%c2_107, %c4_108] : memref<4x8xf32, #tpu.memory_space<smem>>
    %137 = vector.broadcast %136 : f32 to vector<25x16xf32>
    %138 = arith.mulf %135, %137 : vector<25x16xf32>
    %139 = arith.addf %134, %138 : vector<25x16xf32>
    %c5_109 = arith.constant 5 : index
    %c0_110 = arith.constant 0 : index
    %140 = vector.load %arg1[%c5_109, %c0_110] : memref<32x16xf32, #tpu.memory_space<vmem>>, vector<25x16xf32>
    %c2_111 = arith.constant 2 : index
    %c5_112 = arith.constant 5 : index
    %141 = memref.load %arg2[%c2_111, %c5_112] : memref<4x8xf32, #tpu.memory_space<smem>>
    %142 = vector.broadcast %141 : f32 to vector<25x16xf32>
    %143 = arith.mulf %140, %142 : vector<25x16xf32>
    %144 = arith.addf %139, %143 : vector<25x16xf32>
    %c6_113 = arith.constant 6 : index
    %c0_114 = arith.constant 0 : index
    %145 = vector.load %arg1[%c6_113, %c0_114] : memref<32x16xf32, #tpu.memory_space<vmem>>, vector<25x16xf32>
    %c2_115 = arith.constant 2 : index
    %c6_116 = arith.constant 6 : index
    %146 = memref.load %arg2[%c2_115, %c6_116] : memref<4x8xf32, #tpu.memory_space<smem>>
    %147 = vector.broadcast %146 : f32 to vector<25x16xf32>
    %148 = arith.mulf %145, %147 : vector<25x16xf32>
    %149 = arith.addf %144, %148 : vector<25x16xf32>
    %c7_117 = arith.constant 7 : index
    %c0_118 = arith.constant 0 : index
    %150 = vector.load %arg1[%c7_117, %c0_118] : memref<32x16xf32, #tpu.memory_space<vmem>>, vector<25x16xf32>
    %c2_119 = arith.constant 2 : index
    %c7_120 = arith.constant 7 : index
    %151 = memref.load %arg2[%c2_119, %c7_120] : memref<4x8xf32, #tpu.memory_space<smem>>
    %152 = vector.broadcast %151 : f32 to vector<25x16xf32>
    %153 = arith.mulf %150, %152 : vector<25x16xf32>
    %154 = arith.addf %149, %153 : vector<25x16xf32>
    %c0_121 = arith.constant 0 : index
    %c2_122 = arith.constant 2 : index
    %155 = memref.load %arg3[%c0_121, %c2_122] : memref<1x4xf32, #tpu.memory_space<smem>>
    %156 = vector.broadcast %155 : f32 to vector<25x16xf32>
    %157 = arith.addf %154, %156 : vector<25x16xf32>
    %cst_123 = arith.constant 0.000000e+00 : f32
    %158 = vector.broadcast %cst_123 : f32 to vector<25x16xf32>
    %159 = arith.maximumf %157, %158 : vector<25x16xf32>
    %c0_124 = arith.constant 0 : index
    %c2_125 = arith.constant 2 : index
    %160 = memref.load %arg4[%c0_124, %c2_125] : memref<1x4xf32, #tpu.memory_space<smem>>
    %161 = vector.broadcast %160 : f32 to vector<25x16xf32>
    %162 = arith.mulf %159, %161 : vector<25x16xf32>
    %c0_126 = arith.constant 0 : index
    %c2_127 = arith.constant 2 : index
    %163 = memref.load %arg5[%c0_126, %c2_127] : memref<1x4xf32, #tpu.memory_space<smem>>
    %164 = vector.broadcast %163 : f32 to vector<25x16xf32>
    %165 = arith.addf %162, %164 : vector<25x16xf32>
    %c64 = arith.constant 64 : index
    %c0_128 = arith.constant 0 : index
    %166 = vector.load %arg13[%c64, %c0_128] : memref<128x16xf32, #tpu.memory_space<vmem>>, vector<25x16xf32>
    tpu.vector_store %arg13[%c64, %c0_128], %165 {strides = array<i32>} : memref<128x16xf32, #tpu.memory_space<vmem>>, vector<25x16xf32>,
    %c64_129 = arith.constant 64 : index
    %c0_130 = arith.constant 0 : index
    %167 = vector.load %arg13[%c64_129, %c0_130] : memref<128x16xf32, #tpu.memory_space<vmem>>, vector<25x16xf32>
    %c65 = arith.constant 65 : index
    %c0_131 = arith.constant 0 : index
    %168 = vector.load %arg13[%c65, %c0_131] : memref<128x16xf32, #tpu.memory_space<vmem>>, vector<25x16xf32>
    %169 = arith.maximumf %167, %168 : vector<25x16xf32>
    %c66 = arith.constant 66 : index
    %c0_132 = arith.constant 0 : index
    %170 = vector.load %arg13[%c66, %c0_132] : memref<128x16xf32, #tpu.memory_space<vmem>>, vector<25x16xf32>
    %171 = arith.maximumf %169, %170 : vector<25x16xf32>
    %c64_133 = arith.constant 64 : index
    %c0_134 = arith.constant 0 : index
    %172 = vector.load %arg13[%c64_133, %c0_134] : memref<128x16xf32, #tpu.memory_space<vmem>>, vector<25x16xf32>
    tpu.vector_store %arg13[%c64_133, %c0_134], %171 {strides = array<i32>} : memref<128x16xf32, #tpu.memory_space<vmem>>, vector<25x16xf32>,
    %c0_135 = arith.constant 0 : index
    %c0_136 = arith.constant 0 : index
    %173 = vector.load %arg1[%c0_135, %c0_136] : memref<32x16xf32, #tpu.memory_space<vmem>>, vector<25x16xf32>
    %c3_137 = arith.constant 3 : index
    %c0_138 = arith.constant 0 : index
    %174 = memref.load %arg2[%c3_137, %c0_138] : memref<4x8xf32, #tpu.memory_space<smem>>
    %175 = vector.broadcast %174 : f32 to vector<25x16xf32>
    %176 = arith.mulf %173, %175 : vector<25x16xf32>
    %c1_139 = arith.constant 1 : index
    %c0_140 = arith.constant 0 : index
    %177 = vector.load %arg1[%c1_139, %c0_140] : memref<32x16xf32, #tpu.memory_space<vmem>>, vector<25x16xf32>
    %c3_141 = arith.constant 3 : index
    %c1_142 = arith.constant 1 : index
    %178 = memref.load %arg2[%c3_141, %c1_142] : memref<4x8xf32, #tpu.memory_space<smem>>
    %179 = vector.broadcast %178 : f32 to vector<25x16xf32>
    %180 = arith.mulf %177, %179 : vector<25x16xf32>
    %181 = arith.addf %176, %180 : vector<25x16xf32>
    %c2_143 = arith.constant 2 : index
    %c0_144 = arith.constant 0 : index
    %182 = vector.load %arg1[%c2_143, %c0_144] : memref<32x16xf32, #tpu.memory_space<vmem>>, vector<25x16xf32>
    %c3_145 = arith.constant 3 : index
    %c2_146 = arith.constant 2 : index
    %183 = memref.load %arg2[%c3_145, %c2_146] : memref<4x8xf32, #tpu.memory_space<smem>>
    %184 = vector.broadcast %183 : f32 to vector<25x16xf32>
    %185 = arith.mulf %182, %184 : vector<25x16xf32>
    %186 = arith.addf %181, %185 : vector<25x16xf32>
    %c3_147 = arith.constant 3 : index
    %c0_148 = arith.constant 0 : index
    %187 = vector.load %arg1[%c3_147, %c0_148] : memref<32x16xf32, #tpu.memory_space<vmem>>, vector<25x16xf32>
    %c3_149 = arith.constant 3 : index
    %c3_150 = arith.constant 3 : index
    %188 = memref.load %arg2[%c3_149, %c3_150] : memref<4x8xf32, #tpu.memory_space<smem>>
    %189 = vector.broadcast %188 : f32 to vector<25x16xf32>
    %190 = arith.mulf %187, %189 : vector<25x16xf32>
    %191 = arith.addf %186, %190 : vector<25x16xf32>
    %c4_151 = arith.constant 4 : index
    %c0_152 = arith.constant 0 : index
    %192 = vector.load %arg1[%c4_151, %c0_152] : memref<32x16xf32, #tpu.memory_space<vmem>>, vector<25x16xf32>
    %c3_153 = arith.constant 3 : index
    %c4_154 = arith.constant 4 : index
    %193 = memref.load %arg2[%c3_153, %c4_154] : memref<4x8xf32, #tpu.memory_space<smem>>
    %194 = vector.broadcast %193 : f32 to vector<25x16xf32>
    %195 = arith.mulf %192, %194 : vector<25x16xf32>
    %196 = arith.addf %191, %195 : vector<25x16xf32>
    %c5_155 = arith.constant 5 : index
    %c0_156 = arith.constant 0 : index
    %197 = vector.load %arg1[%c5_155, %c0_156] : memref<32x16xf32, #tpu.memory_space<vmem>>, vector<25x16xf32>
    %c3_157 = arith.constant 3 : index
    %c5_158 = arith.constant 5 : index
    %198 = memref.load %arg2[%c3_157, %c5_158] : memref<4x8xf32, #tpu.memory_space<smem>>
    %199 = vector.broadcast %198 : f32 to vector<25x16xf32>
    %200 = arith.mulf %197, %199 : vector<25x16xf32>
    %201 = arith.addf %196, %200 : vector<25x16xf32>
    %c6_159 = arith.constant 6 : index
    %c0_160 = arith.constant 0 : index
    %202 = vector.load %arg1[%c6_159, %c0_160] : memref<32x16xf32, #tpu.memory_space<vmem>>, vector<25x16xf32>
    %c3_161 = arith.constant 3 : index
    %c6_162 = arith.constant 6 : index
    %203 = memref.load %arg2[%c3_161, %c6_162] : memref<4x8xf32, #tpu.memory_space<smem>>
    %204 = vector.broadcast %203 : f32 to vector<25x16xf32>
    %205 = arith.mulf %202, %204 : vector<25x16xf32>
    %206 = arith.addf %201, %205 : vector<25x16xf32>
    %c7_163 = arith.constant 7 : index
    %c0_164 = arith.constant 0 : index
    %207 = vector.load %arg1[%c7_163, %c0_164] : memref<32x16xf32, #tpu.memory_space<vmem>>, vector<25x16xf32>
    %c3_165 = arith.constant 3 : index
    %c7_166 = arith.constant 7 : index
    %208 = memref.load %arg2[%c3_165, %c7_166] : memref<4x8xf32, #tpu.memory_space<smem>>
    %209 = vector.broadcast %208 : f32 to vector<25x16xf32>
    %210 = arith.mulf %207, %209 : vector<25x16xf32>
    %211 = arith.addf %206, %210 : vector<25x16xf32>
    %c0_167 = arith.constant 0 : index
    %c3_168 = arith.constant 3 : index
    %212 = memref.load %arg3[%c0_167, %c3_168] : memref<1x4xf32, #tpu.memory_space<smem>>
    %213 = vector.broadcast %212 : f32 to vector<25x16xf32>
    %214 = arith.addf %211, %213 : vector<25x16xf32>
    %cst_169 = arith.constant 0.000000e+00 : f32
    %215 = vector.broadcast %cst_169 : f32 to vector<25x16xf32>
    %216 = arith.maximumf %214, %215 : vector<25x16xf32>
    %c0_170 = arith.constant 0 : index
    %c3_171 = arith.constant 3 : index
    %217 = memref.load %arg4[%c0_170, %c3_171] : memref<1x4xf32, #tpu.memory_space<smem>>
    %218 = vector.broadcast %217 : f32 to vector<25x16xf32>
    %219 = arith.mulf %216, %218 : vector<25x16xf32>
    %c0_172 = arith.constant 0 : index
    %c3_173 = arith.constant 3 : index
    %220 = memref.load %arg5[%c0_172, %c3_173] : memref<1x4xf32, #tpu.memory_space<smem>>
    %221 = vector.broadcast %220 : f32 to vector<25x16xf32>
    %222 = arith.addf %219, %221 : vector<25x16xf32>
    %c96 = arith.constant 96 : index
    %c0_174 = arith.constant 0 : index
    %223 = vector.load %arg13[%c96, %c0_174] : memref<128x16xf32, #tpu.memory_space<vmem>>, vector<25x16xf32>
    tpu.vector_store %arg13[%c96, %c0_174], %222 {strides = array<i32>} : memref<128x16xf32, #tpu.memory_space<vmem>>, vector<25x16xf32>,
    %c96_175 = arith.constant 96 : index
    %c0_176 = arith.constant 0 : index
    %224 = vector.load %arg13[%c96_175, %c0_176] : memref<128x16xf32, #tpu.memory_space<vmem>>, vector<25x16xf32>
    %c97 = arith.constant 97 : index
    %c0_177 = arith.constant 0 : index
    %225 = vector.load %arg13[%c97, %c0_177] : memref<128x16xf32, #tpu.memory_space<vmem>>, vector<25x16xf32>
    %226 = arith.maximumf %224, %225 : vector<25x16xf32>
    %c98 = arith.constant 98 : index
    %c0_178 = arith.constant 0 : index
    %227 = vector.load %arg13[%c98, %c0_178] : memref<128x16xf32, #tpu.memory_space<vmem>>, vector<25x16xf32>
    %228 = arith.maximumf %226, %227 : vector<25x16xf32>
    %c96_179 = arith.constant 96 : index
    %c0_180 = arith.constant 0 : index
    %229 = vector.load %arg13[%c96_179, %c0_180] : memref<128x16xf32, #tpu.memory_space<vmem>>, vector<25x16xf32>
    tpu.vector_store %arg13[%c96_179, %c0_180], %228 {strides = array<i32>} : memref<128x16xf32, #tpu.memory_space<vmem>>, vector<25x16xf32>,
    %c0_181 = arith.constant 0 : index
    %c0_182 = arith.constant 0 : index
    %230 = vector.load %arg6[%c0_181, %c0_182] : memref<32x128xf32, #tpu.memory_space<vmem>>, vector<32x128xf32>
    %c0_183 = arith.constant 0 : index
    %c0_184 = arith.constant 0 : index
    %231 = vector.load %arg13[%c0_183, %c0_184] : memref<128x16xf32, #tpu.memory_space<vmem>>, vector<128x16xf32>
    %cst_185 = arith.constant dense<0.000000e+00> : vector<32x16xf32>
    %232 = tpu.matmul %230, %231, %cst_185 {dimension_numbers = #tpu.dot_dimension_numbers<[1], [0], [0], [1], [0, 0, 1, 1], [], []>} : vector<32x128xf32>, vector<128x16xf32>, vector<32x16xf32> -> vector<32x16xf32>
    %c0_186 = arith.constant 0 : index
    %c0_187 = arith.constant 0 : index
    %233 = vector.load %arg7[%c0_186, %c0_187] : memref<32x1xf32, #tpu.memory_space<vmem>>, vector<32x1xf32>
    %234 = vector.broadcast %233 : vector<32x1xf32> to vector<32x16xf32>
    %235 = arith.addf %232, %234 : vector<32x16xf32>
    %cst_188 = arith.constant 0.000000e+00 : f32
    %236 = vector.broadcast %cst_188 : f32 to vector<32x16xf32>
    %237 = arith.maximumf %235, %236 : vector<32x16xf32>
    %c0_189 = arith.constant 0 : index
    %c0_190 = arith.constant 0 : index
    %238 = vector.load %arg8[%c0_189, %c0_190] : memref<32x1xf32, #tpu.memory_space<vmem>>, vector<32x1xf32>
    %239 = vector.broadcast %238 : vector<32x1xf32> to vector<32x16xf32>
    %240 = arith.mulf %237, %239 : vector<32x16xf32>
    %c0_191 = arith.constant 0 : index
    %c0_192 = arith.constant 0 : index
    %241 = vector.load %arg9[%c0_191, %c0_192] : memref<32x1xf32, #tpu.memory_space<vmem>>, vector<32x1xf32>
    %242 = vector.broadcast %241 : vector<32x1xf32> to vector<32x16xf32>
    %243 = arith.addf %240, %242 : vector<32x16xf32>
    %c0_193 = arith.constant 0 : index
    %c0_194 = arith.constant 0 : index
    %244 = vector.load %arg10[%c0_193, %c0_194] : memref<32x1xf32, #tpu.memory_space<vmem>>, vector<32x1xf32>
    %245 = vector.broadcast %244 : vector<32x1xf32> to vector<32x16xf32>
    %246 = arith.mulf %243, %245 : vector<32x16xf32>
    %cst_195 = arith.constant dense<0.000000e+00> : vector<16xf32>
    %247 = vector.multi_reduction <add>, %246, %cst_195 [0] : vector<32x16xf32> to vector<16xf32>
    %248 = vector.shape_cast %247 : vector<16xf32> to vector<1x16xf32>
    %c0_196 = arith.constant 0 : index
    %c0_197 = arith.constant 0 : index
    %249 = memref.load %arg11[%c0_196, %c0_197] : memref<1x1xf32, #tpu.memory_space<smem>>
    %250 = vector.broadcast %249 : f32 to vector<1x16xf32>
    %251 = arith.addf %248, %250 : vector<1x16xf32>
    %252 = vector.shape_cast %251 : vector<1x16xf32> to vector<1x1x16xf32>
    %c0_198 = arith.constant 0 : index
    %c0_199 = arith.constant 0 : index
    %c0_200 = arith.constant 0 : index
    %253 = vector.load %arg12[%c0_198, %c0_199, %c0_200] : memref<1x1x16xf32, #tpu.memory_space<vmem>>, vector<1x1x16xf32>
    tpu.vector_store %arg12[%c0_198, %c0_199, %c0_200], %252 {strides = array<i32>} : memref<1x1x16xf32, #tpu.memory_space<vmem>>, vector<1x1x16xf32>,
    return
  }
  func.func @transform_0(%arg0: i32) -> (i32, i32) {
    %c0_i32 = arith.constant 0 : i32
    %c0_i32_0 = arith.constant 0 : i32
    return %c0_i32, %arg0 : i32, i32
  }
  func.func @transform_1(%arg0: i32) -> (i32, i32) {
    %c0_i32 = arith.constant 0 : i32
    %c0_i32_0 = arith.constant 0 : i32
    %c0_i32_1 = arith.constant 0 : i32
    return %c0_i32, %c0_i32_0 : i32, i32
  }
  func.func @transform_2(%arg0: i32) -> (i32, i32) {
    %c0_i32 = arith.constant 0 : i32
    %c0_i32_0 = arith.constant 0 : i32
    %c0_i32_1 = arith.constant 0 : i32
    return %c0_i32, %c0_i32_0 : i32, i32
  }
  func.func @transform_3(%arg0: i32) -> (i32, i32) {
    %c0_i32 = arith.constant 0 : i32
    %c0_i32_0 = arith.constant 0 : i32
    %c0_i32_1 = arith.constant 0 : i32
    return %c0_i32, %c0_i32_0 : i32, i32
  }
  func.func @transform_4(%arg0: i32) -> (i32, i32) {
    %c0_i32 = arith.constant 0 : i32
    %c0_i32_0 = arith.constant 0 : i32
    %c0_i32_1 = arith.constant 0 : i32
    return %c0_i32, %c0_i32_0 : i32, i32
  }
  func.func @transform_5(%arg0: i32) -> (i32, i32) {
    %c0_i32 = arith.constant 0 : i32
    %c0_i32_0 = arith.constant 0 : i32
    %c0_i32_1 = arith.constant 0 : i32
    return %c0_i32, %c0_i32_0 : i32, i32
  }
  func.func @transform_6(%arg0: i32) -> (i32, i32) {
    %c0_i32 = arith.constant 0 : i32
    %c0_i32_0 = arith.constant 0 : i32
    %c0_i32_1 = arith.constant 0 : i32
    return %c0_i32, %c0_i32_0 : i32, i32
  }
  func.func @transform_7(%arg0: i32) -> (i32, i32) {
    %c0_i32 = arith.constant 0 : i32
    %c0_i32_0 = arith.constant 0 : i32
    %c0_i32_1 = arith.constant 0 : i32
    return %c0_i32, %c0_i32_0 : i32, i32
  }
  func.func @transform_8(%arg0: i32) -> (i32, i32) {
    %c0_i32 = arith.constant 0 : i32
    %c0_i32_0 = arith.constant 0 : i32
    %c0_i32_1 = arith.constant 0 : i32
    return %c0_i32, %c0_i32_0 : i32, i32
  }
  func.func @transform_9(%arg0: i32) -> (i32, i32) {
    %c0_i32 = arith.constant 0 : i32
    %c0_i32_0 = arith.constant 0 : i32
    %c0_i32_1 = arith.constant 0 : i32
    return %c0_i32, %c0_i32_0 : i32, i32
  }
  func.func @transform_10(%arg0: i32) -> (i32, i32) {
    %c0_i32 = arith.constant 0 : i32
    %c0_i32_0 = arith.constant 0 : i32
    %c0_i32_1 = arith.constant 0 : i32
    return %c0_i32, %c0_i32_0 : i32, i32
  }
  func.func @transform_11(%arg0: i32) -> (i32, i32, i32) {
    %c0_i32 = arith.constant 0 : i32
    %c0_i32_0 = arith.constant 0 : i32
    %c0_i32_1 = arith.constant 0 : i32
    return %arg0, %c0_i32, %c0_i32_0 : i32, i32, i32
  }
}

</mosaic_0001>

<bundles_post_ra>
// kernel: _lambda_.1
= control target key start
LH: loop header
LB: loop body
LE: loop exit
PB: predicated region body
PF: predicated region fallthrough
CT: control target
= control target key end

     0   :  { %17 = vsyncpa [#allocation6], 0  ;;  %s1891_s0 = inlined_call_operand.vmem [shape: f32[32,16], index: 0, kind: input, shape index: {}]   ;;  %s1892_s1 = inlined_call_operand.vmem [shape: f32[4,8], index: 1, kind: input, shape index: {}]   ;;  %s1893_s2 = inlined_call_operand.vmem [shape: f32[1,4], index: 2, kind: input, shape index: {}]   ;;  %s1894_s3 = inlined_call_operand.vmem [shape: f32[1,4], index: 3, kind: input, shape index: {}]   ;;  %s1895_s4 = inlined_call_operand.vmem [shape: f32[1,4], index: 4, kind: input, shape index: {}]   ;;  %s1896_s5 = inlined_call_operand.vmem [shape: f32[32,128], index: 5, kind: input, shape index: {}]   ;;  %s1897_s6 = inlined_call_operand.vmem [shape: f32[32,1], index: 6, kind: input, shape index: {}]   ;;  %s1898_s7 = inlined_call_operand.vmem [shape: f32[32,1], index: 7, kind: input, shape index: {}]   ;;  %s1899_s8 = inlined_call_operand.vmem [shape: f32[32,1], index: 8, kind: input, shape index: {}]   ;;  %s1900_s9 = inlined_call_operand.vmem [shape: f32[32,1], index: 9, kind: input, shape index: {}]   ;;  %s1901_s10 = inlined_call_operand.<no memory space> [shape: f32[1,1], index: 10, kind: input, shape index: {}]   ;;  %s1902_s11 = inlined_call_operand.hbm [shape: f32[1,1,16], index: 11, kind: output, shape index: {}]  }
   0x1   :  { %18 = vsyncpa [#allocation8], 0 }
   0x2   :  { %19 = vsyncpa [#allocation11], 0  ;;  %s39_s19 = sshll.u32 %s1893_s2, 4  ;;  %s40_s19 = int_to_ptr.vmem [resolvable:$true] %s39_s19 }
   0x3   :  { %20 = vsyncpa [#allocation5], 0  ;;  %s29_s22 = sshll.u32 %s1892_s1, 4  ;;  %s1128_s23 = scalar_lea.vmem %s40_s19, 16  ;;  %s30_s22 = int_to_ptr.vmem [resolvable:$true] %s29_s22 }
   0x4   :  { %p1129_p0 = scmp.ne.s32.totalorder %s40_s19, %s1128_s23  ;;  %p1133_p1 = scmp.lt.s32.totalorder %s40_s19, %s40_s19 }
   0x5   :  { %p1134_p2 = scmp.lt.s32.totalorder %s1128_s23, %s1128_s23 }
   0x7   :  { %p1135_p3 = por %p1134_p2, %p1133_p1 }
   0x9   :  { %p1136_p4 = pnand %p1135_p3, %p1129_p0 }
   0xb   :  { %1139 = shalt.err (!%p1136_p4)
}
   0xc   :  { %s1204_s24 = smov [#allocation7]   ;;  %s1140_s25 = scalar_lea.vmem %s30_s22, 64 }
   0xd   :  { %42 = dma.vmem_to_smem %s40_s19, 16, %s1204_s24, [#allocation8]  }
   0xe   :  { %p1141_p5 = scmp.ne.s32.totalorder %s30_s22, %s1140_s25  ;;  %p1145_p6 = scmp.lt.s32.totalorder %s30_s22, %s30_s22 }
   0xf   :  { %p1146_p7 = scmp.lt.s32.totalorder %s1140_s25, %s1140_s25 }
  0x11   :  { %p1147_p8 = por %p1146_p7, %p1145_p6 }
  0x13   :  { %p1148_p9 = pnand %p1147_p8, %p1141_p5 }
  0x15   :  { %1151 = shalt.err (!%p1148_p9)
}
  0x16   :  { %s1205_s2 = smov [#allocation4]   ;;  %s49_s27 = sshll.u32 %s1894_s3, 4  ;;  %s50_s27 = int_to_ptr.vmem [resolvable:$true] %s49_s27 }
  0x17   :  { %32 = dma.vmem_to_smem %s30_s22, 64, %s1205_s2, [#allocation6]  }
  0x18   :  { %s59_s30 = sshll.u32 %s1895_s4, 4  ;;  %s1152_s12 = scalar_lea.vmem %s50_s27, 16  ;;  %s60_s30 = int_to_ptr.vmem [resolvable:$true] %s59_s30 }
  0x19   :  { %p1153_p10 = scmp.ne.s32.totalorder %s50_s27, %s1152_s12  ;;  %p1157_p11 = scmp.lt.s32.totalorder %s50_s27, %s50_s27 }
  0x1a   :  { %p1158_p12 = scmp.lt.s32.totalorder %s1152_s12, %s1152_s12 }
  0x1c   :  { %p1159_p13 = por %p1158_p12, %p1157_p11 }
  0x1e   :  { %p1160_p0 = pnand %p1159_p13, %p1153_p10 }
  0x20   :  { %1163 = shalt.err (!%p1160_p0)
}
  0x21   :  { %s1206_s13 = smov [#allocation9]   ;;  %s1164_s14 = scalar_lea.vmem %s60_s30, 16 }
  0x22   :  { %52 = dma.vmem_to_smem %s50_s27, 16, %s1206_s13, [#allocation8]  }
  0x23   :  { %p1165_p1 = scmp.ne.s32.totalorder %s60_s30, %s1164_s14  ;;  %p1169_p2 = scmp.lt.s32.totalorder %s60_s30, %s60_s30 }
  0x24   :  { %p1170_p3 = scmp.lt.s32.totalorder %s1164_s14, %s1164_s14 }
  0x26   :  { %p1171_p4 = por %p1170_p3, %p1169_p2 }
  0x28   :  { %p1172_p5 = pnand %p1171_p4, %p1165_p1 }
  0x2a   :  { %1175 = shalt.err (!%p1172_p5)
}
  0x2b   :  { %s1207_s3 = smov [#allocation10]  }
  0x2c   :  { %62 = dma.vmem_to_smem %s60_s30, 16, %s1207_s3, [#allocation11]  }
  0x2d   :  { %1196 = dma.done.wait [#allocation6], 64  }
  0x2e   :  { %1197 = vsyncadd [#allocation6], 4294967232 }
  0x2f   :  { %1198 = dma.done.wait [#allocation8], 32  }
  0x30   :  { %1199 = vsyncadd [#allocation8], 4294967264 }
  0x31   :  { %1200 = dma.done.wait [#allocation11], 16  }
  0x32   :  { %1201 = vsyncadd [#allocation11], 4294967280 }
  0x33   :  { %87 = sfence }
  0x34   :  { %vm88_vm0 = vcmask 130048   ;;  %v1208_v0 = vmov -3e+38   ;;  %s1018_s4 = sld [smem:[#allocation4 + $0x180]]  ;;  %v1302_v1 = vld [vmem:[%s1891_s0] sm:$0xff]  ;;  %v1309_v2 = vld [vmem:[%s1891_s0 + $0x8] sm:$0xff] }
  0x35   :  { %101 = vst.msk [vmem:[#allocation2 + $0x60] sm:$0xff] %vm88_vm0, %v1208_v0  ;;  %102 = vst.msk [vmem:[#allocation2 + $0x68] sm:$0xff] %vm88_vm0, %v1208_v0  ;;  %s1019_s15 = sld [smem:[#allocation4 + $0x181]]  ;;  %v1314_v3 = vld [vmem:[%s1891_s0 + $0x10] sm:$0xff]  ;;  %v583_v4 = vld [vmem:[%s1891_s0 + $0x18] sm:$0x1] }
  0x36   :  { %103 = vst.msk [vmem:[#allocation2 + $0x70] sm:$0xff] %vm88_vm0, %v1208_v0  ;;  %104 = vst.msk [vmem:[#allocation2 + $0x78] sm:$0xff] %vm88_vm0, %v1208_v0  ;;  %s1020_s16 = sld [smem:[#allocation4 + $0x182]]  ;;  %v1324_v5 = vld [vmem:[%s1891_s0 + $0x1] sm:$0xff]  ;;  %v1329_v6 = vld [vmem:[%s1891_s0 + $0x9] sm:$0xff]  ;;  %v1209_v26 = vmov 0  }
  0x37   :  { %89 = vst.msk [vmem:[#allocation2] sm:$0xff] %vm88_vm0, %v1208_v0  ;;  %90 = vst.msk [vmem:[#allocation2 + $0x8] sm:$0xff] %vm88_vm0, %v1208_v0  ;;  %s1304_s19 = sld [smem:[#allocation4 + $0x183]]  ;;  %v1336_v8 = vld [vmem:[%s1891_s0 + $0x11] sm:$0xff]  ;;  %v593_v9 = vld [vmem:[%s1891_s0 + $0x19] sm:$0x1]  ;;  %1126 = vset.pattern.permute.xlu0 %v1209_v26  ;;  %1127 = vset.pattern.permute.xlu1 %v1209_v26 }
  0x38   :  { %91 = vst.msk [vmem:[#allocation2 + $0x10] sm:$0xff] %vm88_vm0, %v1208_v0  ;;  %92 = vst.msk [vmem:[#allocation2 + $0x18] sm:$0xff] %vm88_vm0, %v1208_v0  ;;  %s1319_s2 = sld [smem:[#allocation4 + $0x184]]  ;;  %v1344_v10 = vld [vmem:[%s1891_s0 + $0x2] sm:$0xff]  ;;  %v1354_v15 = vld [vmem:[%s1891_s0 + $0xa] sm:$0xff]  ;;  %vm238_vm1 = vcmask 122880  }
  0x39   :  { %93 = vst.msk [vmem:[#allocation2 + $0x20] sm:$0xff] %vm88_vm0, %v1208_v0  ;;  %94 = vst.msk [vmem:[#allocation2 + $0x28] sm:$0xff] %vm88_vm0, %v1208_v0  ;;  %s1331_s29 = sld [smem:[#allocation4 + $0x185]]  ;;  %v1359_v16 = vld [vmem:[%s1891_s0 + $0x12] sm:$0xff]  ;;  %v607_v17 = vld [vmem:[%s1891_s0 + $0x1a] sm:$0x1] }
  0x3a   :  { %95 = vst.msk [vmem:[#allocation2 + $0x30] sm:$0xff] %vm88_vm0, %v1208_v0  ;;  %96 = vst.msk [vmem:[#allocation2 + $0x38] sm:$0xff] %vm88_vm0, %v1208_v0  ;;  %v585_v7 = vstv %s1018_s4  ;;  %s1346_s18 = sld [smem:[#allocation4 + $0x186]]  ;;  %v1370_v24 = vld [vmem:[%s1891_s0 + $0x3] sm:$0xff]  ;;  %v1375_v25 = vld [vmem:[%s1891_s0 + $0xb] sm:$0xff] }
  0x3b   :  { %97 = vst.msk [vmem:[#allocation2 + $0x40] sm:$0xff] %vm88_vm0, %v1208_v0  ;;  %98 = vst.msk [vmem:[#allocation2 + $0x48] sm:$0xff] %vm88_vm0, %v1208_v0  ;;  %v586_v11 = vmul.f32 %v585_v7, %v1302_v1  ;;  %v587_v12 = vmul.f32 %v585_v7, %v1309_v2  ;;  %v588_v13 = vmul.f32 %v585_v7, %v1314_v3  ;;  %v595_v18 = vstv %s1019_s15  ;;  %s1377_s28 = sld [smem:[#allocation4 + $0x187]]  ;;  %v1385_v31 = vld [vmem:[%s1891_s0 + $0x13] sm:$0xff]  ;;  %v621_v32 = vld [vmem:[%s1891_s0 + $0x1b] sm:$0x1] }
  0x3c   :  { %99 = vst.msk [vmem:[#allocation2 + $0x50] sm:$0xff] %vm88_vm0, %v1208_v0  ;;  %100 = vst.msk [vmem:[#allocation2 + $0x58] sm:$0xff] %vm88_vm0, %v1208_v0  ;;  %v589_v14 = vmul.f32 %v585_v7, %v583_v4  ;;  %v609_v19 = vstv %s1020_s16  ;;  %v596_v20 = vmul.f32 %v595_v18, %v1324_v5  ;;  %v597_v21 = vmul.f32 %v595_v18, %v1329_v6  ;;  %v1393_v33 = vld [vmem:[%s1891_s0 + $0x4] sm:$0xff]  ;;  %s1395_s3 = sld [smem:[#allocation7 + $0x3]]  ;;  %v1400_v38 = vld [vmem:[%s1891_s0 + $0xc] sm:$0xff] }
  0x3d   :  { %v598_v22 = vmul.f32 %v595_v18, %v1336_v8  ;;  %v599_v23 = vmul.f32 %v595_v18, %v593_v9  ;;  %v610_v27 = vmul.f32 %v609_v19, %v1344_v10  ;;  %v611_v28 = vmul.f32 %v609_v19, %v1354_v15  ;;  %v1405_v39 = vld [vmem:[%s1891_s0 + $0x14] sm:$0xff]  ;;  %v635_v40 = vld [vmem:[%s1891_s0 + $0x1c] sm:$0x1]  ;;  %s1410_s24 = sld [smem:[#allocation9 + $0x3]]  ;;  %v1421_v49 = vld [vmem:[%s1891_s0 + $0x5] sm:$0xff] }
  0x3e   :  { %v612_v29 = vmul.f32 %v609_v19, %v1359_v16  ;;  %v613_v30 = vmul.f32 %v609_v19, %v607_v17  ;;  %v600_v34 = vadd.f32 %v596_v20, %v586_v11  ;;  %v601_v35 = vadd.f32 %v597_v21, %v587_v12  ;;  %s1416_s25 = sld [smem:[#allocation10 + $0x3]]  ;;  %v1431_v54 = vld [vmem:[%s1891_s0 + $0xd] sm:$0xff]  ;;  %v1436_v55 = vld [vmem:[%s1891_s0 + $0x15] sm:$0xff]  ;;  %v649_v56 = vld [vmem:[%s1891_s0 + $0x1d] sm:$0x1] }
  0x3f   :  { %v602_v36 = vadd.f32 %v598_v22, %v588_v13  ;;  %v603_v37 = vadd.f32 %v599_v23, %v589_v14  ;;  %v623_v41 = vstv %s1304_s19  ;;  %v637_v42 = vstv %s1319_s2  ;;  %s1423_s27 = sld [smem:[#allocation4 + $0x100]]  ;;  %v1449_v61 = vld [vmem:[%s1891_s0 + $0x6] sm:$0xff]  ;;  %v1456_v7 = vld [vmem:[%s1891_s0 + $0xe] sm:$0xff] }
  0x40   :  { %v651_v43 = vstv %s1331_s29  ;;  %v665_v44 = vstv %s1346_s18  ;;  %v614_v45 = vadd.f32 %v610_v27, %v600_v34  ;;  %v615_v46 = vadd.f32 %v611_v28, %v601_v35  ;;  %s1441_s30 = sld [smem:[#allocation4 + $0x101]]  ;;  %v1461_v9 = vld [vmem:[%s1891_s0 + $0x16] sm:$0xff]  ;;  %v663_v11 = vld [vmem:[%s1891_s0 + $0x1e] sm:$0x1] }
  0x41   :  { %v616_v47 = vadd.f32 %v612_v29, %v602_v36  ;;  %v617_v48 = vadd.f32 %v613_v30, %v603_v37  ;;  %v624_v50 = vmul.f32 %v623_v41, %v1370_v24  ;;  %v625_v51 = vmul.f32 %v623_v41, %v1375_v25  ;;  %s1451_s14 = sld [smem:[#allocation4 + $0x102]]  ;;  %v1477_v28 = vld [vmem:[%s1891_s0 + $0x7] sm:$0xff]  ;;  %v1482_v35 = vld [vmem:[%s1891_s0 + $0xf] sm:$0xff]  ;;  %v1487_v36 = vld [vmem:[%s1891_s0 + $0x17] sm:$0xff] }
  0x42   :  { %v626_v52 = vmul.f32 %v623_v41, %v1385_v31  ;;  %v627_v53 = vmul.f32 %v623_v41, %v621_v32  ;;  %v638_v57 = vmul.f32 %v637_v42, %v1393_v33  ;;  %v639_v58 = vmul.f32 %v637_v42, %v1400_v38  ;;  %s1466_s1 = sld [smem:[#allocation4 + $0x103]]  ;;  %v677_v37 = vld [vmem:[%s1891_s0 + $0x1f] sm:$0x1] }
  0x43   :  { %v640_v59 = vmul.f32 %v637_v42, %v1405_v39  ;;  %v641_v60 = vmul.f32 %v637_v42, %v635_v40  ;;  %v628_v62 = vadd.f32 %v624_v50, %v614_v45  ;;  %v629_v63 = vadd.f32 %v625_v51, %v615_v46  ;;  %s1557_s15 = sld [smem:[#allocation7 + $0x2]] }
  0x44   :  { %v630_v0 = vadd.f32 %v626_v52, %v616_v47  ;;  %v631_v4 = vadd.f32 %v627_v53, %v617_v48  ;;  %v652_v12 = vmul.f32 %v651_v43, %v1421_v49  ;;  %v653_v13 = vmul.f32 %v651_v43, %v1431_v54  ;;  %v425_v53 = vld [vmem:[%s1891_s0 + $0x18] sm:$0x1]  ;;  %s1592_s23 = sld [smem:[#allocation4 + $0x81]] }
  0x45   :  { %v654_v14 = vmul.f32 %v651_v43, %v1436_v55  ;;  %v655_v17 = vmul.f32 %v651_v43, %v649_v56  ;;  %v642_v18 = vadd.f32 %v638_v57, %v628_v62  ;;  %v643_v19 = vadd.f32 %v639_v58, %v629_v63  ;;  %s1611_s2 = sld [smem:[#allocation4 + $0x82]] }
  0x46   :  { %v644_v20 = vadd.f32 %v640_v59, %v630_v0  ;;  %v645_v21 = vadd.f32 %v641_v60, %v631_v4  ;;  %v666_v22 = vmul.f32 %v665_v44, %v1449_v61  ;;  %v667_v23 = vmul.f32 %v665_v44, %v1456_v7  ;;  %v435_v4 = vld [vmem:[%s1891_s0 + $0x19] sm:$0x1]  ;;  %s1650_s21 = sld [smem:[#allocation4 + $0x87]] }
  0x47   :  { %v668_v26 = vmul.f32 %v665_v44, %v1461_v9  ;;  %v669_v27 = vmul.f32 %v665_v44, %v663_v11  ;;  %v656_v29 = vadd.f32 %v652_v12, %v642_v18  ;;  %v657_v30 = vadd.f32 %v653_v13, %v643_v19  ;;  %s1747_s16 = sld [smem:[#allocation4 + $0x2]] }
  0x48   :  { %v658_v32 = vadd.f32 %v654_v14, %v644_v20  ;;  %v659_v34 = vadd.f32 %v655_v17, %v645_v21  ;;  %v679_v40 = vstv %s1377_s28  ;;  %v689_v41 = vstv %s1395_s3  ;;  %s1697_s28 = sld [smem:[#allocation4]] }
  0x49   :  { %v699_v42 = vstv %s1410_s24  ;;  %v705_v43 = vstv %s1416_s25  ;;  %v670_v44 = vadd.f32 %v666_v22, %v656_v29  ;;  %v671_v45 = vadd.f32 %v667_v23, %v657_v30  ;;  %s1509_s24 = sld [smem:[#allocation4 + $0x104]] }
  0x4a   :  { %v672_v46 = vadd.f32 %v668_v26, %v658_v32  ;;  %v673_v47 = vadd.f32 %v669_v27, %v659_v34  ;;  %v680_v48 = vmul.f32 %v679_v40, %v1477_v28  ;;  %v681_v50 = vmul.f32 %v679_v40, %v1482_v35  ;;  %s1514_s25 = sld [smem:[#allocation4 + $0x105]]  ;;  %v449_v34 = vld [vmem:[%s1891_s0 + $0x1a] sm:$0x1] }
  0x4b   :  { %v682_v51 = vmul.f32 %v679_v40, %v1487_v36  ;;  %v683_v52 = vmul.f32 %v679_v40, %v677_v37  ;;  %v427_v56 = vstv %s1423_s27  ;;  %v437_v57 = vstv %s1441_s30  ;;  %s1516_s27 = sld [smem:[#allocation4 + $0x106]] }
  0x4c   :  { %v451_v58 = vstv %s1451_s14  ;;  %v465_v59 = vstv %s1466_s1  ;;  %v684_v60 = vadd.f32 %v680_v48, %v670_v44  ;;  %v685_v62 = vadd.f32 %v681_v50, %v671_v45  ;;  %s1521_s30 = sld [smem:[#allocation4 + $0x107]] }
  0x4d   :  { %v686_v63 = vadd.f32 %v682_v51, %v672_v46  ;;  %v687_v0 = vadd.f32 %v683_v52, %v673_v47  ;;  %v428_v11 = vmul.f32 %v1302_v1, %v427_v56  ;;  %v429_v12 = vmul.f32 %v1309_v2, %v427_v56  ;;  %s1581_s14 = sld [smem:[#allocation4 + $0x80]] }
  0x4e   :  { %v430_v13 = vmul.f32 %v1314_v3, %v427_v56  ;;  %v431_v14 = vmul.f32 %v427_v56, %v425_v53  ;;  %v690_v17 = vadd.f32 %v689_v41, %v684_v60  ;;  %v691_v18 = vadd.f32 %v689_v41, %v685_v62  ;;  %v463_v56 = vld [vmem:[%s1891_s0 + $0x1b] sm:$0x1]  ;;  %s1768_s4 = sld [smem:[#allocation4 + $0x4]] }
  0x4f   :  { %v692_v19 = vadd.f32 %v689_v41, %v686_v63  ;;  %v693_v20 = vadd.f32 %v689_v41, %v687_v0  ;;  %v438_v21 = vmul.f32 %v1324_v5, %v437_v57  ;;  %v439_v22 = vmul.f32 %v1329_v6, %v437_v57  ;;  %s1772_s20 = sld [smem:[#allocation4 + $0x6]] }
  0x50   :  { %v440_v23 = vmul.f32 %v1336_v8, %v437_v57  ;;  %v441_v26 = vmul.f32 %v437_v57, %v435_v4  ;;  %v694_v27 = vmax.f32 %v690_v17, 0.0  ;;  %v695_v29 = vmax.f32 %v691_v18, 0.0  ;;  %v477_v17 = vld [vmem:[%s1891_s0 + $0x1c] sm:$0x1]  ;;  %v491_v18 = vld [vmem:[%s1891_s0 + $0x1d] sm:$0x1] }
  0x51   :  { %v696_v30 = vmax.f32 %v692_v19, 0.0  ;;  %v697_v32 = vmax.f32 %v693_v20, 0.0  ;;  %v442_v37 = vadd.f32 %v438_v21, %v428_v11  ;;  %v443_v40 = vadd.f32 %v439_v22, %v429_v12  ;;  %v738_v12 = vld [vmem:[%s1896_s5] sm:$0xff]  ;;  %v740_v19 = vld [vmem:[%s1896_s5 + $0x10] sm:$0xff]  ;;  %s1777_s22 = sld [smem:[#allocation4 + $0x7]] }
  0x52   :  { %v444_v41 = vadd.f32 %v440_v23, %v430_v13  ;;  %v445_v44 = vadd.f32 %v441_v26, %v431_v14  ;;  %v700_v45 = vmul.f32 %v699_v42, %v694_v27  ;;  %v701_v46 = vmul.f32 %v699_v42, %v695_v29  ;;  %1081 = vmatprep.mubr.f32.mxu0 %v738_v12  ;;  %v871_v12 = vld [vmem:[%s1898_s7] sm:$0xff] }
  0x53   :  { %v702_v47 = vmul.f32 %v699_v42, %v696_v30  ;;  %v703_v48 = vmul.f32 %v699_v42, %v697_v32  ;;  %v452_v50 = vmul.f32 %v1344_v10, %v451_v58  ;;  %v453_v51 = vmul.f32 %v1354_v15, %v451_v58  ;;  %1084 = vmatprep.mubr.f32.mxu1 %v740_v19  ;;  %v758_v30 = vld [vmem:[%s1897_s6] sm:$0xff]  ;;  %v760_v32 = vld [vmem:[%s1897_s6 + $0x10] sm:$0xff] }
  0x54   :  { %v454_v52 = vmul.f32 %v1359_v16, %v451_v58  ;;  %v455_v53 = vmul.f32 %v451_v58, %v449_v34  ;;  %v706_v57 = vadd.f32 %v705_v43, %v700_v45  ;;  %v707_v60 = vadd.f32 %v705_v43, %v701_v46  ;;  %764 = vperm.xlu0 %1126, %v758_v30   ;;  %v721_v45 = vld [vmem:[#allocation2 + $0x79] sm:$0x1] }
  0x55   :  { %v708_v62 = vadd.f32 %v705_v43, %v702_v47  ;;  %v709_v63 = vadd.f32 %v705_v43, %v703_v48  ;;  %v456_v0 = vadd.f32 %v452_v50, %v442_v37  ;;  %v457_v4 = vadd.f32 %v453_v51, %v443_v40  ;;  %774 = vperm.xlu1 %1127, %v760_v32   ;;  %v759_v51 = vld [vmem:[%s1897_s6 + $0x8] sm:$0xff] }
  0x56   :  { %v458_v11 = vadd.f32 %v454_v52, %v444_v41  ;;  %v459_v42 = vadd.f32 %v455_v53, %v445_v44  ;;  %710 = vst.msk [vmem:[#allocation2 + $0x60] sm:$0xff] %vm88_vm0, %v706_v57  ;;  %711 = vst.msk [vmem:[#allocation2 + $0x68] sm:$0xff] %vm88_vm0, %v707_v60  ;;  %v466_v43 = vmul.f32 %v1370_v24, %v465_v59  ;;  %v479_v20 = vstv %s1509_s24  ;;  %v505_v44 = vld [vmem:[%s1891_s0 + $0x1e] sm:$0x1]  ;;  %s1571_s24 = sld [smem:[#allocation9 + $0x2]] }
  0x57   :  { %712 = vst.msk [vmem:[#allocation2 + $0x70] sm:$0xff] %vm88_vm0, %v708_v62  ;;  %v467_v58 = vmul.f32 %v1375_v25, %v465_v59  ;;  %v468_v13 = vmul.f32 %v1385_v31, %v465_v59  ;;  %v469_v14 = vmul.f32 %v465_v59, %v463_v56  ;;  %v493_v21 = vstv %s1514_s25  ;;  %s1576_s25 = sld [smem:[#allocation10 + $0x2]]  ;;  %v729_v52 = vld [vmem:[#allocation2 + $0x7a] sm:$0x1] }
  0x58   :  { %713 = vst.msk [vmem:[#allocation2 + $0x78] sm:$0x1] %vm238_vm1, %v709_v63  ;;  %v507_v22 = vstv %s1516_s27  ;;  %v1555_v23 = vstv %s1521_s30  ;;  %v470_v59 = vadd.f32 %v466_v43, %v456_v0  ;;  %v480_v34 = vmul.f32 %v1393_v33, %v479_v20  ;;  %v761_v62 = vld [vmem:[%s1897_s6 + $0x18] sm:$0xff]  ;;  %769 = vperm.xlu0 %1126, %v759_v51   ;;  %s1641_s30 = sld [smem:[#allocation4 + $0x85]] }
  0x59   :  { %v471_v26 = vadd.f32 %v467_v58, %v457_v4  ;;  %v472_v27 = vadd.f32 %v468_v13, %v458_v11  ;;  %v473_v29 = vadd.f32 %v469_v14, %v459_v42  ;;  %v481_v37 = vmul.f32 %v1400_v38, %v479_v20  ;;  %v519_v42 = vld [vmem:[%s1891_s0 + $0x1f] sm:$0x1]  ;;  %779 = vperm.xlu1 %1127, %v761_v62   ;;  %s1707_s27 = sld [smem:[#allocation4 + $0x1]] }
  0x5a   :  { %v482_v40 = vmul.f32 %v1405_v39, %v479_v20  ;;  %v483_v41 = vmul.f32 %v479_v20, %v477_v17  ;;  %v494_v46 = vmul.f32 %v1421_v49, %v493_v21  ;;  %v495_v47 = vmul.f32 %v1431_v54, %v493_v21 }
  0x5b   :  { %v496_v48 = vmul.f32 %v1436_v55, %v493_v21  ;;  %v497_v50 = vmul.f32 %v493_v21, %v491_v18  ;;  %v484_v53 = vadd.f32 %v480_v34, %v470_v59  ;;  %v485_v56 = vadd.f32 %v481_v37, %v471_v26 }
  0x5c   :  { %v486_v57 = vadd.f32 %v482_v40, %v472_v27  ;;  %v487_v60 = vadd.f32 %v483_v41, %v473_v29  ;;  %v508_v63 = vmul.f32 %v1449_v61, %v507_v22  ;;  %v509_v0 = vmul.f32 %v1456_v7, %v507_v22  ;;  %v872_v29 = vld [vmem:[%s1898_s7 + $0x8] sm:$0xff]  ;;  %877 = vperm.xlu0 %1126, %v871_v12  }
  0x5d   :  { %v510_v4 = vmul.f32 %v1461_v9, %v507_v22  ;;  %v511_v11 = vmul.f32 %v507_v22, %v505_v44  ;;  %v498_v14 = vadd.f32 %v494_v46, %v484_v53  ;;  %v499_v17 = vadd.f32 %v495_v47, %v485_v56  ;;  %v715_v32 = vld [vmem:[#allocation2 + $0x68] sm:$0xff]  ;;  %882 = vperm.xlu1 %1127, %v872_v29  }
  0x5e   :  { %v716_v43 = vld [vmem:[#allocation2 + $0x70] sm:$0xff]  ;;  %v500_v18 = vadd.f32 %v496_v48, %v486_v57  ;;  %v501_v19 = vadd.f32 %v497_v50, %v487_v60  ;;  %v522_v26 = vmul.f32 %v1477_v28, %v1555_v23  ;;  %v523_v27 = vmul.f32 %v1482_v35, %v1555_v23  ;;  %v718_v34 = vld [vmem:[#allocation2 + $0x61] sm:$0xff] }
  0x5f   :  { %v717_v58 = vld [vmem:[#allocation2 + $0x78] sm:$0x1]  ;;  %v719_v59 = vld [vmem:[#allocation2 + $0x69] sm:$0xff]  ;;  %v512_v37 = vadd.f32 %v508_v63, %v498_v14  ;;  %v513_v40 = vadd.f32 %v509_v0, %v499_v17  ;;  %v714_v50 = vld [vmem:[#allocation2 + $0x60] sm:$0xff]  ;;  %v524_v51 = vmul.f32 %v1487_v36, %v1555_v23  ;;  %v525_v56 = vmul.f32 %v1555_v23, %v519_v42 }
  0x60   :  { %v720_v13 = vld [vmem:[#allocation2 + $0x71] sm:$0xff]  ;;  %v725_v21 = vmax.f32 %v717_v58, %v721_v45  ;;  %v514_v41 = vadd.f32 %v510_v4, %v500_v18  ;;  %v515_v44 = vadd.f32 %v511_v11, %v501_v19  ;;  %v723_v47 = vmax.f32 %v715_v32, %v719_v59  ;;  %v726_v48 = vld [vmem:[#allocation2 + $0x62] sm:$0xff]  ;;  %v277_v59 = vld [vmem:[%s1891_s0 + $0x19] sm:$0x1] }
  0x61   :  { %v724_v20 = vmax.f32 %v716_v43, %v720_v13  ;;  %v728_v22 = vld [vmem:[#allocation2 + $0x72] sm:$0xff]  ;;  %v727_v30 = vld [vmem:[#allocation2 + $0x6a] sm:$0xff]  ;;  %v722_v53 = vmax.f32 %v714_v50, %v718_v34  ;;  %v526_v57 = vadd.f32 %v522_v26, %v512_v37  ;;  %v527_v60 = vadd.f32 %v523_v27, %v513_v40  ;;  %v899_v58 = vld [vmem:[%s1899_s8] sm:$0xff] }
  0x62   :  { %v733_v46 = vmax.f32 %v725_v21, %v729_v52  ;;  %v731_v62 = vmax.f32 %v723_v47, %v727_v30  ;;  %v528_v52 = vadd.f32 %v524_v51, %v514_v41  ;;  %v531_v63 = vstv %s1557_s15  ;;  %v873_v23 = vld [vmem:[%s1898_s7 + $0x10] sm:$0xff]  ;;  %v267_v43 = vld [vmem:[%s1891_s0 + $0x18] sm:$0x1]  ;;  %s1626_s15 = sld [smem:[#allocation4 + $0x83]]  ;;  %905 = vperm.xlu1 %1127, %v899_v58   ;;  %v900_v32 = vld [vmem:[%s1899_s8 + $0x8] sm:$0xff] }
  0x63   :  { %v732_v45 = vmax.f32 %v724_v20, %v728_v22  ;;  %v541_v0 = vstv %s1571_s24  ;;  %v730_v4 = vmax.f32 %v722_v53, %v726_v48  ;;  %v529_v11 = vadd.f32 %v525_v56, %v515_v44  ;;  %887 = vperm.xlu0 %1126, %v873_v23   ;;  %s1635_s24 = sld [smem:[#allocation4 + $0x84]] }
  0x64   :  { %737 = vst.msk [vmem:[#allocation2 + $0x78] sm:$0x1] %vm238_vm1, %v733_v46  ;;  %v532_v42 = vadd.f32 %v531_v63, %v526_v57  ;;  %v533_v12 = vadd.f32 %v531_v63, %v527_v60  ;;  %v534_v13 = vadd.f32 %v531_v63, %v528_v52  ;;  %v547_v14 = vstv %s1576_s25  ;;  %s1704_s25 = sld [smem:[#allocation9 + $0x1]] }
  0x65   :  { %736 = vst.msk [vmem:[#allocation2 + $0x70] sm:$0xff] %vm88_vm0, %v732_v45  ;;  %735 = vst.msk [vmem:[#allocation2 + $0x68] sm:$0xff] %vm88_vm0, %v731_v62  ;;  %v269_v17 = vstv %s1581_s14  ;;  %v279_v18 = vstv %s1592_s23  ;;  %v535_v19 = vadd.f32 %v531_v63, %v529_v11  ;;  %s1645_s14 = sld [smem:[#allocation4 + $0x86]]  ;;  %v293_v56 = vstv %s1611_s2 }
  0x66   :  { %734 = vst.msk [vmem:[#allocation2 + $0x60] sm:$0xff] %vm88_vm0, %v730_v4  ;;  %v536_v20 = vmax.f32 %v532_v42, 0.0  ;;  %v537_v21 = vmax.f32 %v533_v12, 0.0  ;;  %v270_v22 = vmul.f32 %v1302_v1, %v269_v17  ;;  %v538_v26 = vmax.f32 %v534_v13, 0.0  ;;  %v305_v4 = vld [vmem:[%s1891_s0 + $0x1b] sm:$0x1] }
  0x67   :  { %v271_v27 = vmul.f32 %v1309_v2, %v269_v17  ;;  %v272_v29 = vmul.f32 %v1314_v3, %v269_v17  ;;  %v273_v30 = vmul.f32 %v269_v17, %v267_v43  ;;  %v539_v34 = vmax.f32 %v535_v19, 0.0  ;;  %910 = vperm.xlu0 %1126, %v900_v32   ;;  %v319_v19 = vld [vmem:[%s1891_s0 + $0x1c] sm:$0x1] }
  0x68   :  { %v542_v1 = vmul.f32 %v541_v0, %v536_v20  ;;  %v543_v37 = vmul.f32 %v541_v0, %v537_v21  ;;  %v280_v40 = vmul.f32 %v1324_v5, %v279_v18  ;;  %v544_v41 = vmul.f32 %v541_v0, %v538_v26  ;;  %v291_v5 = vld [vmem:[%s1891_s0 + $0x1a] sm:$0x1]  ;;  %v901_v26 = vld [vmem:[%s1899_s8 + $0x10] sm:$0xff] }
  0x69   :  { %v281_v2 = vmul.f32 %v1329_v6, %v279_v18  ;;  %v282_v3 = vmul.f32 %v1336_v8, %v279_v18  ;;  %v283_v44 = vmul.f32 %v279_v18, %v277_v59  ;;  %v545_v47 = vmul.f32 %v541_v0, %v539_v34 }
  0x6a   :  { %v548_v48 = vadd.f32 %v547_v14, %v542_v1  ;;  %v549_v50 = vadd.f32 %v547_v14, %v543_v37  ;;  %v284_v51 = vadd.f32 %v280_v40, %v270_v22  ;;  %v550_v6 = vadd.f32 %v547_v14, %v544_v41 }
  0x6b   :  { %v757_v45 = vld [vmem:[#allocation2 + $0x78] sm:$0xff]  ;;  %v285_v8 = vadd.f32 %v281_v2, %v271_v27  ;;  %v286_v53 = vadd.f32 %v282_v3, %v272_v29  ;;  %v551_v60 = vadd.f32 %v547_v14, %v545_v47  ;;  %v287_v62 = vadd.f32 %v283_v44, %v273_v30  ;;  %v928_v44 = vld [vmem:[%s1900_s9 + $0x8] sm:$0xff]  ;;  %915 = vperm.xlu0 %1126, %v901_v26  }
  0x6c   :  { %v756_v46 = vld [vmem:[#allocation2 + $0x70] sm:$0xff]  ;;  %1049 = vmatprep.subr.mxu0 %v757_v45  ;;  %1087 = vmatprep.subr.mxu1 %v757_v45  ;;  %v755_v57 = vld [vmem:[#allocation2 + $0x68] sm:$0xff]  ;;  %552 = vst.msk [vmem:[#allocation2 + $0x40] sm:$0xff] %vm88_vm0, %v548_v48  ;;  %553 = vst.msk [vmem:[#allocation2 + $0x48] sm:$0xff] %vm88_vm0, %v549_v50  ;;  %v294_v52 = vmul.f32 %v1344_v10, %v293_v56  ;;  %v295_v63 = vmul.f32 %v1354_v15, %v293_v56  ;;  %v307_v11 = vstv %s1626_s15  ;;  %s1850_s15 = sld [smem:[#allocation7]] }
  0x6d   :  { %1050 = vmatpush3.msra.mxu0 %v757_v45  ;;  %1103 = vmatpush3.msra.mxu1 %v757_v45  ;;  %554 = vst.msk [vmem:[#allocation2 + $0x50] sm:$0xff] %vm88_vm0, %v550_v6  ;;  %v296_v0 = vmul.f32 %v1359_v16, %v293_v56  ;;  %v297_v23 = vmul.f32 %v293_v56, %v291_v5  ;;  %v754_v42 = vld [vmem:[#allocation2 + $0x60] sm:$0xff]  ;;  %v321_v13 = vstv %s1635_s24  ;;  %v349_v59 = vstv %s1645_s14  ;;  %v563_v27 = vld [vmem:[#allocation2 + $0x59] sm:$0x1]  ;;  %s1765_s14 = sld [smem:[#allocation4 + $0x3]] }
  0x6e   :  { %1051 = vmatprep.subr.mxu0 %v756_v46  ;;  %1088 = vmatprep.subr.mxu1 %v756_v46  ;;  %555 = vst.msk [vmem:[#allocation2 + $0x58] sm:$0x1] %vm238_vm1, %v551_v60  ;;  %v298_v10 = vadd.f32 %v294_v52, %v284_v51  ;;  %v308_v12 = vmul.f32 %v1370_v24, %v307_v11  ;;  %v335_v24 = vstv %s1641_s30  ;;  %v1686_v34 = vstv %s1650_s21 }
  0x6f   :  { %1052 = vmatpush3.msra.mxu0 %v756_v46  ;;  %1104 = vmatpush3.msra.mxu1 %v756_v46  ;;  %v309_v15 = vmul.f32 %v1375_v25, %v307_v11  ;;  %v299_v16 = vadd.f32 %v295_v63, %v285_v8  ;;  %v300_v43 = vadd.f32 %v296_v0, %v286_v53  ;;  %v874_v25 = vld [vmem:[%s1898_s7 + $0x18] sm:$0xff]  ;;  %s1688_s7 = sld [smem:[#allocation7 + $0x1]] }
  0x70   :  { %1053 = vmatprep.subr.mxu0 %v755_v57  ;;  %1089 = vmatprep.subr.mxu1 %v755_v57  ;;  %v301_v58 = vadd.f32 %v297_v23, %v287_v62  ;;  %v310_v14 = vmul.f32 %v1385_v31, %v307_v11  ;;  %v311_v17 = vmul.f32 %v307_v11, %v305_v4  ;;  %v333_v31 = vld [vmem:[%s1891_s0 + $0x1d] sm:$0x1] }
  0x71   :  { %1054 = vmatpush3.msra.mxu0 %v755_v57  ;;  %1105 = vmatpush3.msra.mxu1 %v755_v57  ;;  %v312_v18 = vadd.f32 %v308_v12, %v298_v10  ;;  %v313_v20 = vadd.f32 %v309_v15, %v299_v16  ;;  %v322_v21 = vmul.f32 %v1393_v33, %v321_v13  ;;  %v927_v33 = vld [vmem:[%s1900_s9] sm:$0xff] }
  0x72   :  { %1055 = vmatprep.subr.mxu0 %v754_v42  ;;  %1090 = vmatprep.subr.mxu1 %v754_v42  ;;  %v323_v22 = vmul.f32 %v1400_v38, %v321_v13  ;;  %v314_v29 = vadd.f32 %v310_v14, %v300_v43  ;;  %v315_v30 = vadd.f32 %v311_v17, %v301_v58  ;;  %v571_v38 = vld [vmem:[#allocation2 + $0x5a] sm:$0x1]  ;;  %v929_v17 = vld [vmem:[%s1900_s9 + $0x10] sm:$0xff] }
  0x73   :  { %1056 = vmatpush3.msra.mxu0 %v754_v42  ;;  %1106 = vmatpush3.msra.mxu1 %v754_v42  ;;  %v324_v32 = vmul.f32 %v1405_v39, %v321_v13  ;;  %v557_v1 = vld [vmem:[#allocation2 + $0x48] sm:$0xff]  ;;  %v325_v40 = vmul.f32 %v321_v13, %v319_v19  ;;  %v326_v41 = vadd.f32 %v322_v21, %v312_v18  ;;  %v347_v39 = vld [vmem:[%s1891_s0 + $0x1e] sm:$0x1]  ;;  %v556_v0 = vld [vmem:[#allocation2 + $0x40] sm:$0xff] }
  0x74   :  { %v560_v37 = vld [vmem:[#allocation2 + $0x41] sm:$0xff]  ;;  %v327_v2 = vadd.f32 %v323_v22, %v313_v20  ;;  %v336_v3 = vmul.f32 %v1421_v49, %v335_v24  ;;  %892 = vperm.xlu1 %1127, %v874_v25   ;;  %v558_v45 = vld [vmem:[#allocation2 + $0x50] sm:$0xff]  ;;  %v337_v50 = vmul.f32 %v1431_v54, %v335_v24  ;;  %v338_v51 = vmul.f32 %v1436_v55, %v335_v24  ;;  %v902_v43 = vld [vmem:[%s1899_s8 + $0x18] sm:$0xff]  ;;  %s1732_s8 = sld [smem:[#allocation10 + $0x1]] }
  0x75   :  { %v561_v46 = vld [vmem:[#allocation2 + $0x49] sm:$0xff]  ;;  %v328_v48 = vadd.f32 %v324_v32, %v314_v29  ;;  %v339_v49 = vmul.f32 %v335_v24, %v333_v31  ;;  %v559_v5 = vld [vmem:[#allocation2 + $0x58] sm:$0x1]  ;;  %v329_v56 = vadd.f32 %v325_v40, %v315_v30  ;;  %v350_v60 = vmul.f32 %v1449_v61, %v349_v59  ;;  %v361_v61 = vld [vmem:[%s1891_s0 + $0x1f] sm:$0x1]  ;;  %938 = vperm.xlu0 %1126, %v928_v44  }
  0x76   :  { %v569_v47 = vld [vmem:[#allocation2 + $0x4a] sm:$0xff]  ;;  %v570_v8 = vld [vmem:[#allocation2 + $0x52] sm:$0xff]  ;;  %v565_v53 = vmax.f32 %v557_v1, %v561_v46  ;;  %v340_v57 = vadd.f32 %v336_v3, %v326_v41  ;;  %v567_v52 = vmax.f32 %v559_v5, %v563_v27  ;;  %v568_v63 = vld [vmem:[#allocation2 + $0x42] sm:$0xff]  ;;  %v341_v23 = vadd.f32 %v337_v50, %v327_v2 }
  0x77   :  { %v562_v6 = vld [vmem:[#allocation2 + $0x51] sm:$0xff]  ;;  %v342_v54 = vadd.f32 %v338_v51, %v328_v48  ;;  %v564_v4 = vmax.f32 %v556_v0, %v560_v37  ;;  %v343_v11 = vadd.f32 %v339_v49, %v329_v56  ;;  %v351_v42 = vmul.f32 %v1456_v7, %v349_v59  ;;  %v106_v25 = vld [vmem:[%s1891_s0 + $0x8] sm:$0xff]  ;;  %v118_v41 = vld [vmem:[%s1891_s0 + $0x19] sm:$0x1] }
  0x78   :  { %v566_v62 = vmax.f32 %v558_v45, %v562_v6  ;;  %v573_v55 = vmax.f32 %v565_v53, %v569_v47  ;;  %933 = vperm.xlu1 %1127, %v927_v33   ;;  %v575_v12 = vmax.f32 %v567_v52, %v571_v38  ;;  %v352_v15 = vmul.f32 %v1461_v9, %v349_v59  ;;  %v105_v9 = vld [vmem:[%s1891_s0] sm:$0xff]  ;;  %v107_v20 = vld [vmem:[%s1891_s0 + $0x10] sm:$0xff] }
  0x79   :  { %v353_v16 = vmul.f32 %v349_v59, %v347_v39  ;;  %v572_v58 = vmax.f32 %v564_v4, %v568_v63  ;;  %v354_v13 = vadd.f32 %v350_v60, %v340_v57  ;;  %v355_v7 = vadd.f32 %v351_v42, %v341_v23  ;;  %v115_v30 = vld [vmem:[%s1891_s0 + $0x1] sm:$0xff]  ;;  %v116_v32 = vld [vmem:[%s1891_s0 + $0x9] sm:$0xff]  ;;  %943 = vperm.xlu0 %1126, %v929_v17   ;;  %v117_v40 = vld [vmem:[%s1891_s0 + $0x11] sm:$0xff] }
  0x7a   :  { %v574_v10 = vmax.f32 %v566_v62, %v570_v8  ;;  %577 = vst.msk [vmem:[#allocation2 + $0x48] sm:$0xff] %vm88_vm0, %v573_v55  ;;  %v364_v14 = vmul.f32 %v1477_v28, %v1686_v34  ;;  %v356_v18 = vadd.f32 %v352_v15, %v342_v54  ;;  %v365_v24 = vmul.f32 %v1482_v35, %v1686_v34  ;;  %v108_v35 = vld [vmem:[%s1891_s0 + $0x18] sm:$0x1]  ;;  %v129_v62 = vld [vmem:[%s1891_s0 + $0x2] sm:$0xff]  ;;  %v130_v54 = vld [vmem:[%s1891_s0 + $0xa] sm:$0xff] }
  0x7b   :  { %579 = vst.msk [vmem:[#allocation2 + $0x58] sm:$0x1] %vm238_vm1, %v575_v12  ;;  %v357_v19 = vadd.f32 %v353_v16, %v343_v11  ;;  %v366_v28 = vmul.f32 %v1487_v36, %v1686_v34  ;;  %v367_v21 = vmul.f32 %v1686_v34, %v361_v61  ;;  %v373_v31 = vstv %s1688_s7  ;;  %v930_v34 = vld [vmem:[%s1900_s9 + $0x18] sm:$0xff]  ;;  %s1770_s9 = sld [smem:[#allocation4 + $0x5]]  ;;  %v143_v16 = vld [vmem:[%s1891_s0 + $0x3] sm:$0xff] }
  0x7c   :  { %578 = vst.msk [vmem:[#allocation2 + $0x50] sm:$0xff] %vm88_vm0, %v574_v10  ;;  %576 = vst.msk [vmem:[#allocation2 + $0x40] sm:$0xff] %vm88_vm0, %v572_v58  ;;  %v368_v22 = vadd.f32 %v364_v14, %v354_v13  ;;  %v110_v36 = vstv %s1697_s28  ;;  %920 = vperm.xlu1 %1127, %v902_v43   ;;  %v369_v59 = vadd.f32 %v365_v24, %v355_v7  ;;  %v383_v27 = vstv %s1704_s25  ;;  %v131_v55 = vld [vmem:[%s1891_s0 + $0x12] sm:$0xff]  ;;  %v132_v12 = vld [vmem:[%s1891_s0 + $0x1a] sm:$0x1] }
  0x7d   :  { %v370_v26 = vadd.f32 %v366_v28, %v356_v18  ;;  %v111_v29 = vmul.f32 %v110_v36, %v105_v9  ;;  %v371_v33 = vadd.f32 %v367_v21, %v357_v19  ;;  %v112_v1 = vmul.f32 %v110_v36, %v106_v25  ;;  %v144_v13 = vld [vmem:[%s1891_s0 + $0xb] sm:$0xff]  ;;  %v145_v18 = vld [vmem:[%s1891_s0 + $0x13] sm:$0xff]  ;;  %v146_v19 = vld [vmem:[%s1891_s0 + $0x1b] sm:$0x1] }
  0x7e   :  { %v374_v38 = vadd.f32 %v373_v31, %v368_v22  ;;  %v113_v37 = vmul.f32 %v110_v36, %v107_v20  ;;  %v375_v2 = vadd.f32 %v373_v31, %v369_v59  ;;  %v114_v39 = vmul.f32 %v110_v36, %v108_v35  ;;  %v157_v21 = vld [vmem:[%s1891_s0 + $0x4] sm:$0xff]  ;;  %v158_v59 = vld [vmem:[%s1891_s0 + $0xc] sm:$0xff] }
  0x7f   :  { %v376_v3 = vadd.f32 %v373_v31, %v370_v26  ;;  %v120_v44 = vstv %s1707_s27  ;;  %v377_v45 = vadd.f32 %v373_v31, %v371_v33  ;;  %v389_v0 = vstv %s1732_s8  ;;  %v159_v26 = vld [vmem:[%s1891_s0 + $0x14] sm:$0xff]  ;;  %v171_v33 = vld [vmem:[%s1891_s0 + $0x5] sm:$0xff] }
  0x80   :  { %v378_v46 = vmax.f32 %v374_v38, 0.0  ;;  %v121_v47 = vmul.f32 %v120_v44, %v115_v30  ;;  %v122_v48 = vmul.f32 %v120_v44, %v116_v32  ;;  %948 = vperm.xlu1 %1127, %v930_v34   ;;  %v379_v50 = vmax.f32 %v375_v2, 0.0  ;;  %v160_v34 = vld [vmem:[%s1891_s0 + $0x1c] sm:$0x1]  ;;  %v172_v38 = vld [vmem:[%s1891_s0 + $0xd] sm:$0xff] }
  0x81   :  { %v380_v51 = vmax.f32 %v376_v3, 0.0  ;;  %v123_v49 = vmul.f32 %v120_v44, %v117_v40  ;;  %v124_v5 = vmul.f32 %v120_v44, %v118_v41  ;;  %v381_v53 = vmax.f32 %v377_v45, 0.0  ;;  %v751_v4 = vld [vmem:[#allocation2 + $0x48] sm:$0xff]  ;;  %v173_v2 = vld [vmem:[%s1891_s0 + $0x15] sm:$0xff]  ;;  %v174_v3 = vld [vmem:[%s1891_s0 + $0x1d] sm:$0x1] }
  0x82   :  { %v753_v6 = vld [vmem:[#allocation2 + $0x58] sm:$0xff]  ;;  %v384_v56 = vmul.f32 %v383_v27, %v378_v46  ;;  %v125_v57 = vadd.f32 %v121_v47, %v111_v29  ;;  %v126_v60 = vadd.f32 %v122_v48, %v112_v1  ;;  %v385_v52 = vmul.f32 %v383_v27, %v379_v50  ;;  %v185_v48 = vld [vmem:[%s1891_s0 + $0x6] sm:$0xff]  ;;  %v186_v50 = vld [vmem:[%s1891_s0 + $0xe] sm:$0xff] }
  0x83   :  { %v752_v8 = vld [vmem:[#allocation2 + $0x50] sm:$0xff]  ;;  %1057 = vmatprep.subr.mxu0 %v753_v6  ;;  %1091 = vmatprep.subr.mxu1 %v753_v6  ;;  %v386_v63 = vmul.f32 %v383_v27, %v380_v51  ;;  %v127_v23 = vadd.f32 %v123_v49, %v113_v37  ;;  %v387_v11 = vmul.f32 %v383_v27, %v381_v53  ;;  %v134_v15 = vstv %s1747_s16  ;;  %v750_v7 = vld [vmem:[#allocation2 + $0x40] sm:$0xff]  ;;  %v405_v51 = vld [vmem:[#allocation2 + $0x39] sm:$0x1] }
  0x84   :  { %1058 = vmatpush3.msra.mxu0 %v753_v6  ;;  %1107 = vmatpush3.msra.mxu1 %v753_v6  ;;  %v390_v42 = vadd.f32 %v389_v0, %v384_v56  ;;  %v128_v10 = vadd.f32 %v124_v5, %v114_v39  ;;  %v391_v61 = vadd.f32 %v389_v0, %v385_v52  ;;  %v148_v24 = vstv %s1765_s14  ;;  %v187_v53 = vld [vmem:[%s1891_s0 + $0x16] sm:$0xff]  ;;  %v188_v56 = vld [vmem:[%s1891_s0 + $0x1e] sm:$0x1]  ;;  %s223_s14 = sld [smem:[#allocation9]] }
  0x85   :  { %1059 = vmatprep.subr.mxu0 %v752_v8  ;;  %1092 = vmatprep.subr.mxu1 %v752_v8  ;;  %v392_v43 = vadd.f32 %v389_v0, %v386_v63  ;;  %v135_v58 = vmul.f32 %v134_v15, %v129_v62  ;;  %v393_v14 = vadd.f32 %v389_v0, %v387_v11  ;;  %v162_v22 = vstv %s1768_s4  ;;  %s229_s4 = sld [smem:[#allocation10]] }
  0x86   :  { %1060 = vmatpush3.msra.mxu0 %v752_v8  ;;  %1108 = vmatpush3.msra.mxu1 %v752_v8  ;;  %394 = vst.msk [vmem:[#allocation2 + $0x20] sm:$0xff] %vm88_vm0, %v390_v42  ;;  %v136_v9 = vmul.f32 %v134_v15, %v130_v54  ;;  %v137_v17 = vmul.f32 %v134_v15, %v131_v55  ;;  %395 = vst.msk [vmem:[#allocation2 + $0x28] sm:$0xff] %vm88_vm0, %v391_v61  ;;  %v176_v27 = vstv %s1770_s9  ;;  %s1210_s9 = smov [#allocation12]  }
  0x87   :  { %1061 = vmatprep.subr.mxu0 %v751_v4  ;;  %1093 = vmatprep.subr.mxu1 %v751_v4  ;;  %396 = vst.msk [vmem:[#allocation2 + $0x30] sm:$0xff] %vm88_vm0, %v392_v43  ;;  %v138_v28 = vmul.f32 %v134_v15, %v132_v12  ;;  %v139_v25 = vadd.f32 %v135_v58, %v125_v57  ;;  %v190_v1 = vstv %s1772_s20  ;;  %v204_v39 = vstv %s1777_s22  ;;  %v413_v57 = vld [vmem:[#allocation2 + $0x3a] sm:$0x1]  ;;  %v200_v15 = vld [vmem:[%s1891_s0 + $0xf] sm:$0xff]  ;;  %s978_s26 = sshll.u32 %s1210_s9, 4  ;;  %s979_s26 = int_to_ptr.vmem [resolvable:$true] %s978_s26 }
  0x88   :  { %v149_v20 = vmul.f32 %v148_v24, %v143_v16  ;;  %1062 = vmatpush3.msra.mxu0 %v751_v4  ;;  %1109 = vmatpush3.msra.mxu1 %v751_v4  ;;  %397 = vst.msk [vmem:[#allocation2 + $0x38] sm:$0x1] %vm238_vm1, %v393_v14  ;;  %v140_v31 = vadd.f32 %v136_v9, %v126_v60  ;;  %v201_v16 = vld [vmem:[%s1891_s0 + $0x17] sm:$0xff]  ;;  %s1176_s6 = scalar_lea.vmem %s979_s26, 16  ;;  %s1180_s19 = scalar_lea.vmem %s979_s26, 32 }
  0x89   :  { %v141_v35 = vadd.f32 %v137_v17, %v127_v23  ;;  %v150_v36 = vmul.f32 %v148_v24, %v144_v13  ;;  %1063 = vmatprep.subr.mxu0 %v750_v7  ;;  %1094 = vmatprep.subr.mxu1 %v750_v7  ;;  %v142_v29 = vadd.f32 %v138_v28, %v128_v10  ;;  %v199_v23 = vld [vmem:[%s1891_s0 + $0x7] sm:$0xff]  ;;  %p1177_p6 = scmp.ne.s32.totalorder %s979_s26, %s1176_s6  ;;  %p1181_p7 = scmp.lt.s32.totalorder %s979_s26, %s979_s26 }
  0x8a   :  { %v151_v30 = vmul.f32 %v148_v24, %v145_v18  ;;  %v152_v32 = vmul.f32 %v148_v24, %v146_v19  ;;  %1064 = vmatpush3.msra.mxu0 %v750_v7  ;;  %1110 = vmatpush3.msra.mxu1 %v750_v7  ;;  %v153_v37 = vadd.f32 %v149_v20, %v139_v25  ;;  %p1182_p8 = scmp.lt.s32.totalorder %s1180_s19, %s1176_s6 }
  0x8b   :  { %v154_v40 = vadd.f32 %v150_v36, %v140_v31  ;;  %v163_v41 = vmul.f32 %v162_v22, %v157_v21  ;;  %v164_v46 = vmul.f32 %v162_v22, %v158_v59  ;;  %v165_v47 = vmul.f32 %v162_v22, %v159_v26  ;;  %v202_v36 = vld [vmem:[%s1891_s0 + $0x1f] sm:$0x1] }
  0x8c   :  { %v155_v44 = vadd.f32 %v151_v30, %v141_v35  ;;  %v156_v45 = vadd.f32 %v152_v32, %v142_v29  ;;  %v166_v49 = vmul.f32 %v162_v22, %v160_v34  ;;  %v177_v6 = vmul.f32 %v176_v27, %v171_v33  ;;  %p1183_p9 = por %p1182_p8, %p1181_p7 }
  0x8d   :  { %v167_v5 = vadd.f32 %v163_v41, %v153_v37  ;;  %v178_v8 = vmul.f32 %v176_v27, %v172_v38  ;;  %v398_v60 = vld [vmem:[#allocation2 + $0x20] sm:$0xff]  ;;  %v168_v62 = vadd.f32 %v164_v46, %v154_v40  ;;  %v179_v63 = vmul.f32 %v176_v27, %v173_v2  ;;  %v399_v19 = vld [vmem:[#allocation2 + $0x28] sm:$0xff] }
  0x8e   :  { %v169_v52 = vadd.f32 %v165_v47, %v155_v44  ;;  %v180_v0 = vmul.f32 %v176_v27, %v174_v3  ;;  %v400_v54 = vld [vmem:[#allocation2 + $0x30] sm:$0xff]  ;;  %v170_v11 = vadd.f32 %v166_v49, %v156_v45  ;;  %v191_v10 = vmul.f32 %v190_v1, %v185_v48  ;;  %v402_v24 = vld [vmem:[#allocation2 + $0x21] sm:$0xff]  ;;  %p1184_p10 = pnand %p1183_p9, %p1177_p6 }
  0x8f   :  { %v403_v55 = vld [vmem:[#allocation2 + $0x29] sm:$0xff]  ;;  %v181_v42 = vadd.f32 %v177_v6, %v167_v5  ;;  %v192_v12 = vmul.f32 %v190_v1, %v186_v50  ;;  %v401_v61 = vld [vmem:[#allocation2 + $0x38] sm:$0x1]  ;;  %v182_v13 = vadd.f32 %v178_v8, %v168_v62  ;;  %v193_v14 = vmul.f32 %v190_v1, %v187_v53 }
  0x90   :  { %v411_v4 = vld [vmem:[#allocation2 + $0x2a] sm:$0xff]  ;;  %v412_v58 = vld [vmem:[#allocation2 + $0x32] sm:$0xff]  ;;  %v183_v7 = vadd.f32 %v179_v63, %v169_v52  ;;  %v194_v9 = vmul.f32 %v190_v1, %v188_v56  ;;  %v409_v18 = vmax.f32 %v401_v61, %v405_v51  ;;  %v410_v28 = vld [vmem:[#allocation2 + $0x22] sm:$0xff]  ;;  %v184_v25 = vadd.f32 %v180_v0, %v170_v11 }
  0x91   :  { %v404_v43 = vld [vmem:[#allocation2 + $0x31] sm:$0xff]  ;;  %v195_v20 = vadd.f32 %v191_v10, %v181_v42  ;;  %v407_v21 = vmax.f32 %v399_v19, %v403_v55  ;;  %v406_v22 = vmax.f32 %v398_v60, %v402_v24  ;;  %v196_v31 = vadd.f32 %v192_v12, %v182_v13  ;;  %v255_v55 = vld [vmem:[#allocation2 + $0x1a] sm:$0x1] }
  0x92   :  { %v408_v17 = vmax.f32 %v400_v54, %v404_v43  ;;  %v197_v35 = vadd.f32 %v193_v14, %v183_v7  ;;  %v417_v26 = vmax.f32 %v409_v18, %v413_v57  ;;  %v198_v27 = vadd.f32 %v194_v9, %v184_v25  ;;  %v247_v54 = vld [vmem:[#allocation2 + $0x19] sm:$0x1] }
  0x93   :  { %v205_v29 = vmul.f32 %v204_v39, %v199_v23  ;;  %v415_v30 = vmax.f32 %v407_v21, %v411_v4  ;;  %v414_v32 = vmax.f32 %v406_v22, %v410_v28  ;;  %v206_v34 = vmul.f32 %v204_v39, %v200_v15  ;;  %v739_v22 = vld [vmem:[%s1896_s5 + $0x8] sm:$0xff] }
  0x94   :  { %v416_v59 = vmax.f32 %v408_v17, %v412_v58  ;;  %v207_v33 = vmul.f32 %v204_v39, %v201_v16  ;;  %421 = vst.msk [vmem:[#allocation2 + $0x38] sm:$0x1] %vm238_vm1, %v417_v26  ;;  %v208_v38 = vmul.f32 %v204_v39, %v202_v36  ;;  %v214_v41 = vstv %s1850_s15 }
  0x95   :  { %v209_v1 = vadd.f32 %v205_v29, %v195_v20  ;;  %419 = vst.msk [vmem:[#allocation2 + $0x28] sm:$0xff] %vm88_vm0, %v415_v30  ;;  %418 = vst.msk [vmem:[#allocation2 + $0x20] sm:$0xff] %vm88_vm0, %v414_v32  ;;  %v210_v37 = vadd.f32 %v206_v34, %v196_v31  ;;  %v224_v51 = vstv %s223_s14  ;;  %v230_v56 = vstv %s229_s4  ;;  %v741_v31 = vld [vmem:[%s1896_s5 + $0x18] sm:$0xff] }
  0x96   :  { %420 = vst.msk [vmem:[#allocation2 + $0x30] sm:$0xff] %vm88_vm0, %v416_v59  ;;  %v211_v40 = vadd.f32 %v207_v33, %v197_v35  ;;  %v212_v2 = vadd.f32 %v208_v38, %v198_v27 }
  0x97   :  { %v215_v3 = vadd.f32 %v214_v41, %v209_v1  ;;  %v216_v44 = vadd.f32 %v214_v41, %v210_v37 }
  0x98   :  { %v217_v45 = vadd.f32 %v214_v41, %v211_v40  ;;  %v218_v46 = vadd.f32 %v214_v41, %v212_v2 }
  0x99   :  { %v219_v47 = vmax.f32 %v215_v3, 0.0  ;;  %v220_v48 = vmax.f32 %v216_v44, 0.0 }
  0x9a   :  { %v221_v50 = vmax.f32 %v217_v45, 0.0  ;;  %v222_v49 = vmax.f32 %v218_v46, 0.0 }
  0x9b   :  { %v225_v5 = vmul.f32 %v224_v51, %v219_v47  ;;  %v749_v39 = vld [vmem:[#allocation2 + $0x38] sm:$0xff]  ;;  %v226_v8 = vmul.f32 %v224_v51, %v220_v48 }
  0x9c   :  { %v227_v53 = vmul.f32 %v224_v51, %v221_v50  ;;  %1065 = vmatprep.subr.mxu0 %v749_v39  ;;  %1095 = vmatprep.subr.mxu1 %v749_v39  ;;  %v228_v57 = vmul.f32 %v224_v51, %v222_v49  ;;  %v747_v62 = vld [vmem:[#allocation2 + $0x28] sm:$0xff]  ;;  %v746_v23 = vld [vmem:[#allocation2 + $0x20] sm:$0xff] }
  0x9d   :  { %v748_v6 = vld [vmem:[#allocation2 + $0x30] sm:$0xff]  ;;  %v231_v60 = vadd.f32 %v230_v56, %v225_v5  ;;  %1066 = vmatpush3.msra.mxu0 %v749_v39  ;;  %1111 = vmatpush3.msra.mxu1 %v749_v39  ;;  %v232_v52 = vadd.f32 %v230_v56, %v226_v8 }
  0x9e   :  { %v233_v63 = vadd.f32 %v230_v56, %v227_v53  ;;  %1067 = vmatprep.subr.mxu0 %v748_v6  ;;  %1096 = vmatprep.subr.mxu1 %v748_v6  ;;  %v234_v0 = vadd.f32 %v230_v56, %v228_v57 }
  0x9f   :  { %235 = vst.msk [vmem:[#allocation2] sm:$0xff] %vm88_vm0, %v231_v60  ;;  %1068 = vmatpush3.msra.mxu0 %v748_v6  ;;  %1112 = vmatpush3.msra.mxu1 %v748_v6  ;;  %236 = vst.msk [vmem:[#allocation2 + $0x8] sm:$0xff] %vm88_vm0, %v232_v52 }
  0xa0   :  { %237 = vst.msk [vmem:[#allocation2 + $0x10] sm:$0xff] %vm88_vm0, %v233_v63  ;;  %1069 = vmatprep.subr.mxu0 %v747_v62  ;;  %1097 = vmatprep.subr.mxu1 %v747_v62 }
  0xa1   :  { %239 = vst.msk [vmem:[#allocation2 + $0x18] sm:$0x1] %vm238_vm1, %v234_v0  ;;  %1070 = vmatpush3.msra.mxu0 %v747_v62  ;;  %1113 = vmatpush3.msra.mxu1 %v747_v62 }
  0xa2   :  { %1071 = vmatprep.subr.mxu0 %v746_v23  ;;  %1098 = vmatprep.subr.mxu1 %v746_v23 }
  0xa3   :  { %1072 = vmatpush3.msra.mxu0 %v746_v23  ;;  %1114 = vmatpush3.msra.mxu1 %v746_v23 }
  0xa6   :  { %v240_v4 = vld [vmem:[#allocation2] sm:$0xff]  ;;  %v241_v58 = vld [vmem:[#allocation2 + $0x8] sm:$0xff] }
  0xa7   :  { %v242_v11 = vld [vmem:[#allocation2 + $0x10] sm:$0xff]  ;;  %v244_v13 = vld [vmem:[#allocation2 + $0x1] sm:$0xff] }
  0xa8   :  { %v245_v42 = vld [vmem:[#allocation2 + $0x9] sm:$0xff]  ;;  %v243_v12 = vld [vmem:[#allocation2 + $0x18] sm:$0x1]  ;;  %v248_v9 = vmax.f32 %v240_v4, %v244_v13 }
  0xa9   :  { %v253_v10 = vld [vmem:[#allocation2 + $0xa] sm:$0xff]  ;;  %v254_v16 = vld [vmem:[#allocation2 + $0x12] sm:$0xff]  ;;  %v251_v43 = vmax.f32 %v243_v12, %v247_v54  ;;  %v252_v7 = vld [vmem:[#allocation2 + $0x2] sm:$0xff]  ;;  %v249_v14 = vmax.f32 %v241_v58, %v245_v42 }
  0xaa   :  { %v246_v15 = vld [vmem:[#allocation2 + $0x11] sm:$0xff]  ;;  %v256_v24 = vmax.f32 %v248_v9, %v252_v7 }
  0xab   :  { %v250_v61 = vmax.f32 %v242_v11, %v246_v15  ;;  %v259_v18 = vmax.f32 %v251_v43, %v255_v55  ;;  %v257_v19 = vmax.f32 %v249_v14, %v253_v10  ;;  %v969_v14 = vstv %s1901_s10 }
  0xac   :  { %260 = vst.msk [vmem:[#allocation2] sm:$0xff] %vm88_vm0, %v256_v24 }
  0xad   :  { %v258_v17 = vmax.f32 %v250_v61, %v254_v16  ;;  %263 = vst.msk [vmem:[#allocation2 + $0x18] sm:$0x1] %vm238_vm1, %v259_v18 }
  0xae   :  { %261 = vst.msk [vmem:[#allocation2 + $0x8] sm:$0xff] %vm88_vm0, %v257_v19 }
  0xaf   :  { %262 = vst.msk [vmem:[#allocation2 + $0x10] sm:$0xff] %vm88_vm0, %v258_v17 }
  0xb3   :  { %v742_v21 = vld [vmem:[#allocation2] sm:$0xff] }
  0xb4   :  { %v745_v28 = vld [vmem:[#allocation2 + $0x18] sm:$0xff] }
  0xb5   :  { %1073 = vmatprep.subr.mxu0 %v745_v28  ;;  %1099 = vmatprep.subr.mxu1 %v745_v28  ;;  %v743_v20 = vld [vmem:[#allocation2 + $0x8] sm:$0xff] }
  0xb6   :  { %v744_v25 = vld [vmem:[#allocation2 + $0x10] sm:$0xff]  ;;  %1074 = vmatpush3.msra.mxu0 %v745_v28  ;;  %1115 = vmatpush3.msra.mxu1 %v745_v28 }
  0xb7   :  { %1075 = vmatprep.subr.mxu0 %v744_v25  ;;  %1100 = vmatprep.subr.mxu1 %v744_v25 }
  0xb8   :  { %1076 = vmatpush3.msra.mxu0 %v744_v25  ;;  %1116 = vmatpush3.msra.mxu1 %v744_v25 }
  0xb9   :  { %1077 = vmatprep.subr.mxu0 %v743_v20  ;;  %1101 = vmatprep.subr.mxu1 %v743_v20 }
  0xba   :  { %1078 = vmatpush3.msra.mxu0 %v743_v20  ;;  %1117 = vmatpush3.msra.mxu1 %v743_v20 }
  0xbb   :  { %1079 = vmatprep.subr.mxu0 %v742_v21  ;;  %1102 = vmatprep.subr.mxu1 %v742_v21 }
  0xbc   :  { %1080 = vmatpush3.msra.mxu0 %v742_v21  ;;  %1118 = vmatpush3.msra.mxu1 %v742_v21 }
  0xbd   :  { %1082 = vmatmul.mubr.f32.vlgmr.msra.gmra.mxu0 %v739_v22  ;;  %1085 = vmatmul.mubr.f32.vlgmr.msra.gmra.mxu1 %v741_v31 }
  0xcf   :  { %v765_v35 = vpop.permute.xlu0 %764 }
  0xd0   :  { %v775_v36 = vpop.permute.xlu1 %774 }
  0xd3   :  { %v770_v59 = vpop.permute.xlu0 %769 }
  0xd4   :  { %v780_v26 = vpop.permute.xlu1 %779 }
  0xd7   :  { %v878_v27 = vpop.permute.xlu0 %877 }
  0xd8   :  { %v883_v29 = vpop.permute.xlu1 %882 }
  0xdd   :  { %v906_v32 = vpop.permute.xlu1 %905 }
  0xde   :  { %v888_v30 = vpop.permute.xlu0 %887 }
  0xe2   :  { %v911_v34 = vpop.permute.xlu0 %910 }
  0xe6   :  { %v916_v38 = vpop.permute.xlu0 %915 }
  0xef   :  { %v893_v33 = vpop.permute.xlu1 %892 }
  0xf0   :  { %v939_v50 = vpop.permute.xlu0 %938 }
  0xf3   :  { %v934_v1 = vpop.permute.xlu1 %933 }
  0xf4   :  { %v944_v63 = vpop.permute.xlu0 %943 }
  0xf7   :  { %v921_v6 = vpop.permute.xlu1 %920 }
  0xfb   :  { %v949_v54 = vpop.permute.xlu1 %948 }
 0x17d   :  { %v1083_v37 = vpop.f32.mrf.mxu0  ;;  %v1086_v40 = vpop.f32.mrf.mxu1 }
 0x17e   :  { %v854_v41 = vadd.f32 %v1083_v37, %v770_v59  ;;  %v864_v2 = vadd.f32 %v1086_v40, %v780_v26 }
 0x17f   :  { %v848_v3 = vpop.f32.mrf.mxu0  ;;  %v858_v44 = vpop.f32.mrf.mxu1 }
 0x180   :  { %v868_v45 = vmax.f32 %v854_v41, 0.0  ;;  %v870_v46 = vmax.f32 %v864_v2, 0.0  ;;  %v849_v47 = vadd.f32 %v848_v3, %v765_v35  ;;  %v859_v48 = vadd.f32 %v858_v44, %v775_v36 }
 0x182   :  { %v896_v51 = vmul.f32 %v883_v29, %v868_v45  ;;  %v898_v49 = vmul.f32 %v893_v33, %v870_v46  ;;  %v867_v5 = vmax.f32 %v849_v47, 0.0  ;;  %v869_v39 = vmax.f32 %v859_v48, 0.0 }
 0x184   :  { %v924_v8 = vadd.f32 %v911_v34, %v896_v51  ;;  %v895_v53 = vmul.f32 %v878_v27, %v867_v5  ;;  %v897_v56 = vmul.f32 %v888_v30, %v869_v39  ;;  %v926_v60 = vadd.f32 %v921_v6, %v898_v49 }
 0x186   :  { %v952_v57 = vmul.f32 %v939_v50, %v924_v8  ;;  %v923_v62 = vadd.f32 %v906_v32, %v895_v53  ;;  %v925_v52 = vadd.f32 %v916_v38, %v897_v56  ;;  %v954_v4 = vmul.f32 %v949_v54, %v926_v60 }
 0x188   :  { %v951_v0 = vmul.f32 %v934_v1, %v923_v62  ;;  %v953_v23 = vmul.f32 %v944_v63, %v925_v52  ;;  %v956_v55 = vsel %vm88_vm0, %v952_v57, 0.0  ;;  %v960_v15 = vsel %vm88_vm0, %v954_v4, 0.0 }
 0x18a   :  { %v955_v11 = vsel %vm88_vm0, %v951_v0, 0.0  ;;  %v958_v10 = vsel %vm88_vm0, %v953_v23, 0.0 }
 0x18b   :  { %v957_v42 = vadd.f32 %v956_v55, %v955_v11 }
 0x18d   :  { %v959_v12 = vadd.f32 %v958_v10, %v957_v42 }
 0x18f   :  { %v961_v16 = vadd.f32 %v960_v15, %v959_v12 }
 0x191   :  { %v962_v61 = vrot.slane %v961_v16, 4 }
 0x193   :  { %v963_v43 = vadd.f32 %v962_v61, %v961_v16 }
 0x195   :  { %v964_v58 = vrot.slane %v963_v43, 2 }
 0x197   :  { %v965_v13 = vadd.f32 %v964_v58, %v963_v43 }
 0x199   :  { %v966_v7 = vrot.slane %v965_v13, 1 }
 0x19b   :  { %v967_v9 = vadd.f32 %v966_v7, %v965_v13 }
 0x19d   :  { %v970_v17 = vadd.f32 %v969_v14, %v967_v9 }
 0x19f   :  { %971 = vst.msk [vmem:[#allocation12] sm:$0x1] %vm238_vm1, %v970_v17 }
 0x1a0   :  { %1187 = shalt.err (!%p1184_p10)
}
 0x1a1   :  { %981 = dma.vmem_to_hbm [thread:$0]  %s979_s26, 16, %s1902_s11, [#allocation5]  }
 0x1a2   :  { %1202 = dma.done.wait [#allocation5], 16  }
 0x1a3   :  { %1203 = vsyncadd [#allocation5], 4294967280 }
 0x1a4   :  { %985 = vsyncpa [#allocation5], 1 }
 0x1a5   :  { %986 = vsyncpa [#allocation6], 1 }
 0x1a6   :  { %987 = vsyncpa [#allocation8], 1 }
 0x1a7   :  { %988 = vsyncpa [#allocation11], 1 }

</bundles_post_ra>
